<compile_context>
chip_gen: v5e
topology: v5e:2x2
jax: 0.10.0
libtpu: 0.0.40
codegen_flags: <defaults>
</compile_context>

<pallas_src>
import math
import functools

import jax
import jax.numpy as jnp
from jax.experimental import pallas as pl
from jax.experimental.pallas import tpu as pltpu


# ---------------------------------------------------------------------------
# Config
# ---------------------------------------------------------------------------

# Set to jnp.bfloat16 on v6e/v7x to double MXU throughput and halve weight /
# activation DMA bytes; accumulation stays f32 (preferred_element_type) and
# softmax/LayerNorm elementwise math stays f32 either way.
MATMUL_DTYPE = jnp.float32

# Scoped VMEM headroom: safely below the physical budget of v5e/v6e (128 MiB)
# and v7x (64 MiB per TensorCore).
VMEM_LIMIT_BYTES = 48 * 1024 * 1024


def _mm(a, b):
    """MXU matmul with f32 accumulation."""
    return jnp.dot(a.astype(MATMUL_DTYPE), b.astype(MATMUL_DTYPE),
                   preferred_element_type=jnp.float32)


def _mm_t(a, b):
    """a @ b.T (contract last dims) without materializing the transpose."""
    return jax.lax.dot_general(
        a.astype(MATMUL_DTYPE), b.astype(MATMUL_DTYPE),
        dimension_numbers=(((1,), (1,)), ((), ())),
        preferred_element_type=jnp.float32)


def _const_spec(shape):
    """Block = whole array, same block for every grid step => stays VMEM-resident."""
    return pl.BlockSpec(shape, lambda i: tuple(0 for _ in shape))


def _compiler_params():
    return pltpu.CompilerParams(
        dimension_semantics=("parallel",),
        vmem_limit_bytes=VMEM_LIMIT_BYTES)


def _token_tile(m):
    # Full array if small (always a legal block); otherwise 512-row tiles
    # (multiple of 8 sublanes, big enough to hit ~85% of HBM roofline).
    return m if m <= 512 else 512


# ---------------------------------------------------------------------------
# Pallas kernels
# ---------------------------------------------------------------------------

def _attn_block_kernel(x_ref, *refs, nhead, scale_qk, eps, apply_pe, pe_scale):
    """Fused: [PE] -> QKV proj -> per-head attention -> out proj -> add & LN1."""
    if apply_pe:
        (pe_ref, wqkv_ref, bqkv_ref, wout_ref, bout_ref,
         mask_ref, g_ref, b_ref, o_ref) = refs
    else:
        (wqkv_ref, bqkv_ref, wout_ref, bout_ref,
         mask_ref, g_ref, b_ref, o_ref) = refs

    x = x_ref[0]                                       # [S, D]
    if apply_pe:                                       # layer 0 only
        x = x * pe_scale + pe_ref[...]
    S, D = x.shape
    dh = D // nhead

    # Fused QKV projection: one wide MXU matmul, result stays in VMEM.
    qkv = _mm(x, wqkv_ref[...]) + bqkv_ref[...]        # [S, 3D]
    mask = mask_ref[...]                               # [S, S] additive mask

    # TODO(synk): for long sequences, replace the per-head full softmax with a
    # kv-tiled online-softmax (flash) loop to bound the [S,S] score footprint.
    ctx = None                                         # out-proj accumulator
    for h in range(nhead):                             # static unroll
        q = qkv[:, h * dh:(h + 1) * dh]                # [S, dh]
        k = qkv[:, D + h * dh:D + (h + 1) * dh]
        v = qkv[:, 2 * D + h * dh:2 * D + (h + 1) * dh]

        s = _mm_t(q, k) * scale_qk + mask              # [S, S]
        s = s - jnp.max(s, axis=-1, keepdims=True)
        p = jnp.exp(s)
        p = p * pl.reciprocal(jnp.sum(p, axis=-1, keepdims=True), approx=True)
        o_h = _mm(p, v)                                # [S, dh]

        # out_proj folded per head: concat_h(o_h) @ W_out == sum_h o_h @ W_out[h]
        part = _mm(o_h, wout_ref[h * dh:(h + 1) * dh, :])
        ctx = part if ctx is None else ctx + part
    attn_out = ctx + bout_ref[...]                     # [S, D]

    # Residual + LayerNorm1 (post-norm, biased variance, eps=1e-5) in f32.
    y = x + attn_out
    mu = jnp.mean(y, axis=-1, keepdims=True)
    yc = y - mu
    var = jnp.mean(yc * yc, axis=-1, keepdims=True)
    o_ref[0] = yc * jax.lax.rsqrt(var + eps) * g_ref[...] + b_ref[...]


def _ffn_block_kernel(x_ref, w1_ref, b1_ref, w2_ref, b2_ref, g_ref, b_ref,
                      o_ref, *, eps):
    """Fused: lin1 + ReLU + lin2 + residual add + LayerNorm2."""
    x = x_ref[...]                                     # [tm, D]
    h = jnp.maximum(_mm(x, w1_ref[...]) + b1_ref[...], 0.0)
    f = _mm(h, w2_ref[...]) + b2_ref[...]
    y = x + f
    mu = jnp.mean(y, axis=-1, keepdims=True)
    yc = y - mu
    var = jnp.mean(yc * yc, axis=-1, keepdims=True)
    o_ref[...] = yc * jax.lax.rsqrt(var + eps) * g_ref[...] + b_ref[...]


def _head_kernel(x_ref, w1_ref, b1_ref, w2_ref, b2_ref, o_ref):
    """Fused: pre_classifier + ReLU + (dropout=identity) + classifier."""
    h = jnp.maximum(_mm(x_ref[...], w1_ref[...]) + b1_ref[...], 0.0)
    o_ref[...] = _mm(h, w2_ref[...]) + b2_ref[...]


# ---------------------------------------------------------------------------
# pallas_call wrappers
# ---------------------------------------------------------------------------

def attn_block(x, lp, mask, pe, *, nhead, pe_scale, eps=1e-5):
    """x: [B, S, D] -> [B, S, D]. Grid over batch ('parallel' for megacore)."""
    B, S, D = x.shape
    dh = D // nhead
    apply_pe = pe is not None
    kern = functools.partial(
        _attn_block_kernel, nhead=nhead, scale_qk=1.0 / math.sqrt(dh),
        eps=eps, apply_pe=apply_pe, pe_scale=pe_scale)

    in_specs = [pl.BlockSpec((1, S, D), lambda b: (b, 0, 0))]
    args = [x]
    if apply_pe:
        in_specs.append(_const_spec((S, D)))           # PE table, not broadcast
        args.append(pe)
    in_specs += [
        _const_spec((D, 3 * D)), _const_spec((1, 3 * D)),
        _const_spec((D, D)), _const_spec((1, D)),
        _const_spec((S, S)),
        _const_spec((1, D)), _const_spec((1, D)),
    ]
    args += [
        lp["in_proj_w"], lp["in_proj_b"].reshape(1, -1),
        lp["out_proj_w"], lp["out_proj_b"].reshape(1, -1),
        mask,
        lp["ln1_g"].reshape(1, -1), lp["ln1_b"].reshape(1, -1),
    ]
    return pl.pallas_call(
        kern,
        out_shape=jax.ShapeDtypeStruct((B, S, D), jnp.float32),
        grid=(B,),
        in_specs=in_specs,
        out_specs=pl.BlockSpec((1, S, D), lambda b: (b, 0, 0)),
        compiler_params=_compiler_params(),
    )(*args)


def ffn_block(x2d, lp, *, eps=1e-5):
    """x2d: [M, D] flattened tokens -> [M, D]. Grid over token tiles."""
    M, D = x2d.shape
    H = lp["lin1_w"].shape[1]
    tm = _token_tile(M)
    return pl.pallas_call(
        functools.partial(_ffn_block_kernel, eps=eps),
        out_shape=jax.ShapeDtypeStruct((M, D), jnp.float32),
        grid=(pl.cdiv(M, tm),),
        in_specs=[pl.BlockSpec((tm, D), lambda i: (i, 0)),   # stream activations
                  _const_spec((D, H)), _const_spec((1, H)),  # resident weights
                  _const_spec((H, D)), _const_spec((1, D)),
                  _const_spec((1, D)), _const_spec((1, D))],
        out_specs=pl.BlockSpec((tm, D), lambda i: (i, 0)),
        compiler_params=_compiler_params(),
    )(x2d, lp["lin1_w"], lp["lin1_b"].reshape(1, -1),
      lp["lin2_w"], lp["lin2_b"].reshape(1, -1),
      lp["ln2_g"].reshape(1, -1), lp["ln2_b"].reshape(1, -1))


def classifier_head(x2d, pre_w, pre_b, cls_w, cls_b):
    M, D = x2d.shape
    C = cls_w.shape[1]
    tm = _token_tile(M)
    return pl.pallas_call(
        _head_kernel,
        out_shape=jax.ShapeDtypeStruct((M, C), jnp.float32),
        grid=(pl.cdiv(M, tm),),
        in_specs=[pl.BlockSpec((tm, D), lambda i: (i, 0)),
                  _const_spec((D, D)), _const_spec((1, D)),
                  _const_spec((D, C)), _const_spec((1, C))],
        out_specs=pl.BlockSpec((tm, C), lambda i: (i, 0)),
        compiler_params=_compiler_params(),
    )(x2d, pre_w, pre_b.reshape(1, -1), cls_w, cls_b.reshape(1, -1))


# ---------------------------------------------------------------------------
# Parameters (deterministic synthetic init) & positional encoding table
# ---------------------------------------------------------------------------

def init_params(key, d_model, nhead, d_hid, nlayers, n_class):
    def nxt():
        nonlocal key
        key, sub = jax.random.split(key)
        return sub

    params = {"layers": []}
    for _ in range(nlayers):
        lp = {
            # weights stored [in, out] (transposed vs torch's [out, in])
            "in_proj_w": jax.random.normal(nxt(), (d_model, 3 * d_model),
                                           dtype=jnp.float32) * 0.02,
            "in_proj_b": jnp.zeros((3 * d_model,), jnp.float32),
            "out_proj_w": jax.random.normal(nxt(), (d_model, d_model),
                                            dtype=jnp.float32) * 0.02,
            "out_proj_b": jnp.zeros((d_model,), jnp.float32),
            "lin1_w": jax.random.normal(nxt(), (d_model, d_hid),
                                        dtype=jnp.float32) * 0.02,
            "lin1_b": jnp.zeros((d_hid,), jnp.float32),
            "lin2_w": jax.random.normal(nxt(), (d_hid, d_model),
                                        dtype=jnp.float32) * 0.02,
            "lin2_b": jnp.zeros((d_model,), jnp.float32),
            "ln1_g": jnp.ones((d_model,), jnp.float32),
            "ln1_b": jnp.zeros((d_model,), jnp.float32),
            "ln2_g": jnp.ones((d_model,), jnp.float32),
            "ln2_b": jnp.zeros((d_model,), jnp.float32),
        }
        params["layers"].append(lp)
    params["pre_w"] = jax.random.normal(nxt(), (d_model, d_model),
                                        dtype=jnp.float32) * 0.02
    params["pre_b"] = jnp.zeros((d_model,), jnp.float32)
    params["cls_w"] = jax.random.normal(nxt(), (d_model, n_class),
                                        dtype=jnp.float32) * 0.02
    params["cls_b"] = jnp.zeros((n_class,), jnp.float32)
    return params


def make_pe(seq_len, d_model):
    position = jnp.arange(seq_len, dtype=jnp.float32)[:, None]
    div_term = jnp.exp(jnp.arange(0, d_model, 2, dtype=jnp.float32)
                       * (-math.log(10000.0) / d_model))
    pe = jnp.zeros((seq_len, d_model), jnp.float32)
    pe = pe.at[:, 0::2].set(jnp.sin(position * div_term))
    pe = pe.at[:, 1::2].set(jnp.cos(position * div_term))
    return pe


# ---------------------------------------------------------------------------
# Full forward pass (TransformerModel.forward, eval mode)
# ---------------------------------------------------------------------------

def transformer_forward(params, src, src_mask, d_model, nhead, n_class):
    S, B, D = src.shape
    x = jnp.transpose(src, (1, 0, 2))                  # [B, S, D] batch-major
    pe = make_pe(S, D)                                 # [S, D], stays resident

    for li, lp in enumerate(params["layers"]):
        # layer 0 fuses src*sqrt(d_model) + positional encoding into the kernel
        x = attn_block(x, lp, src_mask,
                       pe if li == 0 else None,
                       nhead=nhead, pe_scale=math.sqrt(d_model))
        x = ffn_block(x.reshape(B * S, D), lp).reshape(B, S, D)

    out = classifier_head(x.reshape(B * S, D),
                          params["pre_w"], params["pre_b"],
                          params["cls_w"], params["cls_b"])
    return jnp.transpose(out.reshape(B, S, n_class), (1, 0, 2))   # [S, B, C]


# ---------------------------------------------------------------------------

if __name__ == "__main__":
    d_model, nhead, d_hid, nlayers, n_class = 32, 2, 64, 2, 4
    S, B = 8, 2

    key = jax.random.PRNGKey(0)
    kp, kx = jax.random.split(key)
    params = init_params(kp, d_model, nhead, d_hid, nlayers, n_class)

    src = jax.random.normal(kx, (S, B, d_model), dtype=jnp.float32)
    src_mask = jnp.zeros((S, S), dtype=jnp.float32)    # additive attention mask

    fwd = jax.jit(functools.partial(transformer_forward,
                                    d_model=d_model, nhead=nhead,
                                    n_class=n_class))
    out = fwd(params, src, src_mask)
    out = jax.block_until_ready(out)
    assert out.shape == (S, B, n_class)
    assert bool(jnp.all(jnp.isfinite(out)))
    print("KERNEL_OK")
</pallas_src>

<mosaic_0001>
module attributes {stable_mosaic.version = 11 : i64} {
  func.func @_attn_block_kernel(%arg0: i32, %arg1: memref<1x8x32xf32, #tpu.memory_space<vmem>>, %arg2: memref<8x32xf32, #tpu.memory_space<vmem>>, %arg3: memref<32x96xf32, #tpu.memory_space<vmem>>, %arg4: memref<1x96xf32, #tpu.memory_space<vmem>>, %arg5: memref<32x32xf32, #tpu.memory_space<vmem>>, %arg6: memref<1x32xf32, #tpu.memory_space<vmem>>, %arg7: memref<8x8xf32, #tpu.memory_space<vmem>>, %arg8: memref<1x32xf32, #tpu.memory_space<vmem>>, %arg9: memref<1x32xf32, #tpu.memory_space<vmem>>, %arg10: memref<1x8x32xf32, #tpu.memory_space<vmem>>) attributes {dimension_semantics = [#tpu.dimension_semantics<parallel>], iteration_bounds = array<i64: 2>, scalar_prefetch = 0 : i64, scratch_operands = 0 : i64, tpu.core_type = #tpu.core_type<tc>, window_params = [{transform_indices = @transform_0, window_bounds = array<i64: 1, 8, 32>}, {pipeline_mode = #tpu.pipeline_mode<synchronous>, transform_indices = @transform_1, window_bounds = array<i64: 8, 32>}, {pipeline_mode = #tpu.pipeline_mode<synchronous>, transform_indices = @transform_2, window_bounds = array<i64: 32, 96>}, {pipeline_mode = #tpu.pipeline_mode<synchronous>, transform_indices = @transform_3, window_bounds = array<i64: 1, 96>}, {pipeline_mode = #tpu.pipeline_mode<synchronous>, transform_indices = @transform_4, window_bounds = array<i64: 32, 32>}, {pipeline_mode = #tpu.pipeline_mode<synchronous>, transform_indices = @transform_5, window_bounds = array<i64: 1, 32>}, {pipeline_mode = #tpu.pipeline_mode<synchronous>, transform_indices = @transform_6, window_bounds = array<i64: 8, 8>}, {pipeline_mode = #tpu.pipeline_mode<synchronous>, transform_indices = @transform_7, window_bounds = array<i64: 1, 32>}, {pipeline_mode = #tpu.pipeline_mode<synchronous>, transform_indices = @transform_8, window_bounds = array<i64: 1, 32>}, {transform_indices = @transform_9, window_bounds = array<i64: 1, 8, 32>}]} {
    %c0 = arith.constant 0 : index
    %c0_0 = arith.constant 0 : index
    %c0_1 = arith.constant 0 : index
    %0 = vector.load %arg1[%c0, %c0_0, %c0_1] : memref<1x8x32xf32, #tpu.memory_space<vmem>>, vector<1x8x32xf32>
    %1 = vector.shape_cast %0 : vector<1x8x32xf32> to vector<8x32xf32>
    %cst = arith.constant 5.65685415 : f32
    %2 = vector.broadcast %cst : f32 to vector<8x32xf32>
    %3 = arith.mulf %1, %2 : vector<8x32xf32>
    %c0_2 = arith.constant 0 : index
    %c0_3 = arith.constant 0 : index
    %4 = vector.load %arg2[%c0_2, %c0_3] : memref<8x32xf32, #tpu.memory_space<vmem>>, vector<8x32xf32>
    %5 = arith.addf %3, %4 : vector<8x32xf32>
    %c0_4 = arith.constant 0 : index
    %c0_5 = arith.constant 0 : index
    %6 = vector.load %arg3[%c0_4, %c0_5] : memref<32x96xf32, #tpu.memory_space<vmem>>, vector<32x96xf32>
    %cst_6 = arith.constant dense<0.000000e+00> : vector<8x96xf32>
    %7 = tpu.matmul %5, %6, %cst_6 {dimension_numbers = #tpu.dot_dimension_numbers<[1], [0], [0], [1], [0, 0, 1, 1], [], []>} : vector<8x32xf32>, vector<32x96xf32>, vector<8x96xf32> -> vector<8x96xf32>
    %c0_7 = arith.constant 0 : index
    %c0_8 = arith.constant 0 : index
    %8 = vector.load %arg4[%c0_7, %c0_8] : memref<1x96xf32, #tpu.memory_space<vmem>>, vector<1x96xf32>
    %9 = vector.broadcast %8 : vector<1x96xf32> to vector<8x96xf32>
    %10 = arith.addf %7, %9 : vector<8x96xf32>
    %c0_9 = arith.constant 0 : index
    %c0_10 = arith.constant 0 : index
    %11 = vector.load %arg7[%c0_9, %c0_10] : memref<8x8xf32, #tpu.memory_space<vmem>>, vector<8x8xf32>
    %12 = vector.extract_strided_slice %10 {offsets = [0, 0], sizes = [8, 16], strides = [1, 1]} : vector<8x96xf32> to vector<8x16xf32>
    %13 = vector.extract_strided_slice %10 {offsets = [0, 32], sizes = [8, 16], strides = [1, 1]} : vector<8x96xf32> to vector<8x16xf32>
    %14 = vector.extract_strided_slice %10 {offsets = [0, 64], sizes = [8, 16], strides = [1, 1]} : vector<8x96xf32> to vector<8x16xf32>
    %cst_11 = arith.constant dense<0.000000e+00> : vector<8x8xf32>
    %15 = tpu.matmul %12, %13, %cst_11 {dimension_numbers = #tpu.dot_dimension_numbers<[1], [1], [0], [0], [0, 0, 1, 0], [], []>} : vector<8x16xf32>, vector<8x16xf32>, vector<8x8xf32> -> vector<8x8xf32>
    %cst_12 = arith.constant 2.500000e-01 : f32
    %16 = vector.broadcast %cst_12 : f32 to vector<8x8xf32>
    %17 = arith.mulf %15, %16 : vector<8x8xf32>
    %18 = arith.addf %17, %11 : vector<8x8xf32>
    %cst_13 = arith.constant dense<0xFF800000> : vector<8xf32>
    %19 = vector.multi_reduction <maximumf>, %18, %cst_13 [1] : vector<8x8xf32> to vector<8xf32>
    %20 = vector.shape_cast %19 : vector<8xf32> to vector<8x1xf32>
    %21 = vector.broadcast %20 : vector<8x1xf32> to vector<8x8xf32>
    %22 = arith.subf %18, %21 : vector<8x8xf32>
    %23 = math.exp %22 : vector<8x8xf32>
    %cst_14 = arith.constant dense<0.000000e+00> : vector<8xf32>
    %24 = vector.multi_reduction <add>, %23, %cst_14 [1] : vector<8x8xf32> to vector<8xf32>
    %25 = vector.shape_cast %24 : vector<8xf32> to vector<8x1xf32>
    %26 = tpu.reciprocal %25 {approx = true} : vector<8x1xf32> -> vector<8x1xf32>
    %27 = vector.broadcast %26 : vector<8x1xf32> to vector<8x8xf32>
    %28 = arith.mulf %23, %27 : vector<8x8xf32>
    %cst_15 = arith.constant dense<0.000000e+00> : vector<8x16xf32>
    %29 = tpu.matmul %28, %14, %cst_15 {dimension_numbers = #tpu.dot_dimension_numbers<[1], [0], [0], [1], [0, 0, 1, 1], [], []>} : vector<8x8xf32>, vector<8x16xf32>, vector<8x16xf32> -> vector<8x16xf32>
    %c0_16 = arith.constant 0 : index
    %c0_17 = arith.constant 0 : index
    %30 = vector.load %arg5[%c0_16, %c0_17] : memref<32x32xf32, #tpu.memory_space<vmem>>, vector<16x32xf32>
    %cst_18 = arith.constant dense<0.000000e+00> : vector<8x32xf32>
    %31 = tpu.matmul %29, %30, %cst_18 {dimension_numbers = #tpu.dot_dimension_numbers<[1], [0], [0], [1], [0, 0, 1, 1], [], []>} : vector<8x16xf32>, vector<16x32xf32>, vector<8x32xf32> -> vector<8x32xf32>
    %32 = vector.extract_strided_slice %10 {offsets = [0, 16], sizes = [8, 16], strides = [1, 1]} : vector<8x96xf32> to vector<8x16xf32>
    %33 = vector.extract_strided_slice %10 {offsets = [0, 48], sizes = [8, 16], strides = [1, 1]} : vector<8x96xf32> to vector<8x16xf32>
    %34 = vector.extract_strided_slice %10 {offsets = [0, 80], sizes = [8, 16], strides = [1, 1]} : vector<8x96xf32> to vector<8x16xf32>
    %cst_19 = arith.constant dense<0.000000e+00> : vector<8x8xf32>
    %35 = tpu.matmul %32, %33, %cst_19 {dimension_numbers = #tpu.dot_dimension_numbers<[1], [1], [0], [0], [0, 0, 1, 0], [], []>} : vector<8x16xf32>, vector<8x16xf32>, vector<8x8xf32> -> vector<8x8xf32>
    %cst_20 = arith.constant 2.500000e-01 : f32
    %36 = vector.broadcast %cst_20 : f32 to vector<8x8xf32>
    %37 = arith.mulf %35, %36 : vector<8x8xf32>
    %38 = arith.addf %37, %11 : vector<8x8xf32>
    %cst_21 = arith.constant dense<0xFF800000> : vector<8xf32>
    %39 = vector.multi_reduction <maximumf>, %38, %cst_21 [1] : vector<8x8xf32> to vector<8xf32>
    %40 = vector.shape_cast %39 : vector<8xf32> to vector<8x1xf32>
    %41 = vector.broadcast %40 : vector<8x1xf32> to vector<8x8xf32>
    %42 = arith.subf %38, %41 : vector<8x8xf32>
    %43 = math.exp %42 : vector<8x8xf32>
    %cst_22 = arith.constant dense<0.000000e+00> : vector<8xf32>
    %44 = vector.multi_reduction <add>, %43, %cst_22 [1] : vector<8x8xf32> to vector<8xf32>
    %45 = vector.shape_cast %44 : vector<8xf32> to vector<8x1xf32>
    %46 = tpu.reciprocal %45 {approx = true} : vector<8x1xf32> -> vector<8x1xf32>
    %47 = vector.broadcast %46 : vector<8x1xf32> to vector<8x8xf32>
    %48 = arith.mulf %43, %47 : vector<8x8xf32>
    %cst_23 = arith.constant dense<0.000000e+00> : vector<8x16xf32>
    %49 = tpu.matmul %48, %34, %cst_23 {dimension_numbers = #tpu.dot_dimension_numbers<[1], [0], [0], [1], [0, 0, 1, 1], [], []>} : vector<8x8xf32>, vector<8x16xf32>, vector<8x16xf32> -> vector<8x16xf32>
    %c16 = arith.constant 16 : index
    %c0_24 = arith.constant 0 : index
    %50 = vector.load %arg5[%c16, %c0_24] : memref<32x32xf32, #tpu.memory_space<vmem>>, vector<16x32xf32>
    %cst_25 = arith.constant dense<0.000000e+00> : vector<8x32xf32>
    %51 = tpu.matmul %49, %50, %cst_25 {dimension_numbers = #tpu.dot_dimension_numbers<[1], [0], [0], [1], [0, 0, 1, 1], [], []>} : vector<8x16xf32>, vector<16x32xf32>, vector<8x32xf32> -> vector<8x32xf32>
    %52 = arith.addf %31, %51 : vector<8x32xf32>
    %c0_26 = arith.constant 0 : index
    %c0_27 = arith.constant 0 : index
    %53 = vector.load %arg6[%c0_26, %c0_27] : memref<1x32xf32, #tpu.memory_space<vmem>>, vector<1x32xf32>
    %54 = vector.broadcast %53 : vector<1x32xf32> to vector<8x32xf32>
    %55 = arith.addf %52, %54 : vector<8x32xf32>
    %56 = arith.addf %5, %55 : vector<8x32xf32>
    %cst_28 = arith.constant dense<0.000000e+00> : vector<8xf32>
    %57 = vector.multi_reduction <add>, %56, %cst_28 [1] : vector<8x32xf32> to vector<8xf32>
    %58 = vector.shape_cast %57 : vector<8xf32> to vector<8x1xf32>
    %cst_29 = arith.constant 3.200000e+01 : f32
    %59 = vector.broadcast %cst_29 : f32 to vector<8x1xf32>
    %60 = arith.divf %58, %59 : vector<8x1xf32>
    %61 = vector.broadcast %60 : vector<8x1xf32> to vector<8x32xf32>
    %62 = arith.subf %56, %61 : vector<8x32xf32>
    %63 = arith.mulf %62, %62 : vector<8x32xf32>
    %cst_30 = arith.constant dense<0.000000e+00> : vector<8xf32>
    %64 = vector.multi_reduction <add>, %63, %cst_30 [1] : vector<8x32xf32> to vector<8xf32>
    %65 = vector.shape_cast %64 : vector<8xf32> to vector<8x1xf32>
    %cst_31 = arith.constant 3.200000e+01 : f32
    %66 = vector.broadcast %cst_31 : f32 to vector<8x1xf32>
    %67 = arith.divf %65, %66 : vector<8x1xf32>
    %cst_32 = arith.constant 9.99999974E-6 : f32
    %68 = vector.broadcast %cst_32 : f32 to vector<8x1xf32>
    %69 = arith.addf %67, %68 : vector<8x1xf32>
    %70 = math.rsqrt %69 : vector<8x1xf32>
    %71 = vector.broadcast %70 : vector<8x1xf32> to vector<8x32xf32>
    %72 = arith.mulf %62, %71 : vector<8x32xf32>
    %c0_33 = arith.constant 0 : index
    %c0_34 = arith.constant 0 : index
    %73 = vector.load %arg8[%c0_33, %c0_34] : memref<1x32xf32, #tpu.memory_space<vmem>>, vector<1x32xf32>
    %74 = vector.broadcast %73 : vector<1x32xf32> to vector<8x32xf32>
    %75 = arith.mulf %72, %74 : vector<8x32xf32>
    %c0_35 = arith.constant 0 : index
    %c0_36 = arith.constant 0 : index
    %76 = vector.load %arg9[%c0_35, %c0_36] : memref<1x32xf32, #tpu.memory_space<vmem>>, vector<1x32xf32>
    %77 = vector.broadcast %76 : vector<1x32xf32> to vector<8x32xf32>
    %78 = arith.addf %75, %77 : vector<8x32xf32>
    %c0_37 = arith.constant 0 : index
    %c0_38 = arith.constant 0 : index
    %c0_39 = arith.constant 0 : index
    %79 = vector.load %arg10[%c0_37, %c0_38, %c0_39] : memref<1x8x32xf32, #tpu.memory_space<vmem>>, vector<1x8x32xf32>
    %80 = vector.shape_cast %79 : vector<1x8x32xf32> to vector<8x32xf32>
    %81 = vector.shape_cast %78 : vector<8x32xf32> to vector<1x8x32xf32>
    tpu.vector_store %arg10[%c0_37, %c0_38, %c0_39], %81 {strides = array<i32>} : memref<1x8x32xf32, #tpu.memory_space<vmem>>, vector<1x8x32xf32>,
    return
  }
  func.func @transform_0(%arg0: i32) -> (i32, i32, i32) {
    %c0_i32 = arith.constant 0 : i32
    %c0_i32_0 = arith.constant 0 : i32
    %c0_i32_1 = arith.constant 0 : i32
    return %arg0, %c0_i32, %c0_i32_0 : i32, i32, i32
  }
  func.func @transform_1(%arg0: i32) -> (i32, i32) {
    %c0_i32 = arith.constant 0 : i32
    %c0_i32_0 = arith.constant 0 : i32
    %c0_i32_1 = arith.constant 0 : i32
    return %c0_i32, %c0_i32_0 : i32, i32
  }
  func.func @transform_2(%arg0: i32) -> (i32, i32) {
    %c0_i32 = arith.constant 0 : i32
    %c0_i32_0 = arith.constant 0 : i32
    %c0_i32_1 = arith.constant 0 : i32
    return %c0_i32, %c0_i32_0 : i32, i32
  }
  func.func @transform_3(%arg0: i32) -> (i32, i32) {
    %c0_i32 = arith.constant 0 : i32
    %c0_i32_0 = arith.constant 0 : i32
    %c0_i32_1 = arith.constant 0 : i32
    return %c0_i32, %c0_i32_0 : i32, i32
  }
  func.func @transform_4(%arg0: i32) -> (i32, i32) {
    %c0_i32 = arith.constant 0 : i32
    %c0_i32_0 = arith.constant 0 : i32
    %c0_i32_1 = arith.constant 0 : i32
    return %c0_i32, %c0_i32_0 : i32, i32
  }
  func.func @transform_5(%arg0: i32) -> (i32, i32) {
    %c0_i32 = arith.constant 0 : i32
    %c0_i32_0 = arith.constant 0 : i32
    %c0_i32_1 = arith.constant 0 : i32
    return %c0_i32, %c0_i32_0 : i32, i32
  }
  func.func @transform_6(%arg0: i32) -> (i32, i32) {
    %c0_i32 = arith.constant 0 : i32
    %c0_i32_0 = arith.constant 0 : i32
    %c0_i32_1 = arith.constant 0 : i32
    return %c0_i32, %c0_i32_0 : i32, i32
  }
  func.func @transform_7(%arg0: i32) -> (i32, i32) {
    %c0_i32 = arith.constant 0 : i32
    %c0_i32_0 = arith.constant 0 : i32
    %c0_i32_1 = arith.constant 0 : i32
    return %c0_i32, %c0_i32_0 : i32, i32
  }
  func.func @transform_8(%arg0: i32) -> (i32, i32) {
    %c0_i32 = arith.constant 0 : i32
    %c0_i32_0 = arith.constant 0 : i32
    %c0_i32_1 = arith.constant 0 : i32
    return %c0_i32, %c0_i32_0 : i32, i32
  }
  func.func @transform_9(%arg0: i32) -> (i32, i32, i32) {
    %c0_i32 = arith.constant 0 : i32
    %c0_i32_0 = arith.constant 0 : i32
    %c0_i32_1 = arith.constant 0 : i32
    return %arg0, %c0_i32, %c0_i32_0 : i32, i32, i32
  }
}

module attributes {stable_mosaic.version = 11 : i64} {
  func.func @_ffn_block_kernel(%arg0: i32, %arg1: memref<16x32xf32, #tpu.memory_space<vmem>>, %arg2: memref<32x64xf32, #tpu.memory_space<vmem>>, %arg3: memref<1x64xf32, #tpu.memory_space<vmem>>, %arg4: memref<64x32xf32, #tpu.memory_space<vmem>>, %arg5: memref<1x32xf32, #tpu.memory_space<vmem>>, %arg6: memref<1x32xf32, #tpu.memory_space<vmem>>, %arg7: memref<1x32xf32, #tpu.memory_space<vmem>>, %arg8: memref<16x32xf32, #tpu.memory_space<vmem>>) attributes {dimension_semantics = [#tpu.dimension_semantics<parallel>], iteration_bounds = array<i64: 1>, scalar_prefetch = 0 : i64, scratch_operands = 0 : i64, tpu.core_type = #tpu.core_type<tc>, window_params = [{transform_indices = @transform_0, window_bounds = array<i64: 16, 32>}, {pipeline_mode = #tpu.pipeline_mode<synchronous>, transform_indices = @transform_1, window_bounds = array<i64: 32, 64>}, {pipeline_mode = #tpu.pipeline_mode<synchronous>, transform_indices = @transform_2, window_bounds = array<i64: 1, 64>}, {pipeline_mode = #tpu.pipeline_mode<synchronous>, transform_indices = @transform_3, window_bounds = array<i64: 64, 32>}, {pipeline_mode = #tpu.pipeline_mode<synchronous>, transform_indices = @transform_4, window_bounds = array<i64: 1, 32>}, {pipeline_mode = #tpu.pipeline_mode<synchronous>, transform_indices = @transform_5, window_bounds = array<i64: 1, 32>}, {pipeline_mode = #tpu.pipeline_mode<synchronous>, transform_indices = @transform_6, window_bounds = array<i64: 1, 32>}, {transform_indices = @transform_7, window_bounds = array<i64: 16, 32>}]} {
    %c0 = arith.constant 0 : index
    %c0_0 = arith.constant 0 : index
    %0 = vector.load %arg1[%c0, %c0_0] : memref<16x32xf32, #tpu.memory_space<vmem>>, vector<16x32xf32>
    %c0_1 = arith.constant 0 : index
    %c0_2 = arith.constant 0 : index
    %1 = vector.load %arg2[%c0_1, %c0_2] : memref<32x64xf32, #tpu.memory_space<vmem>>, vector<32x64xf32>
    %cst = arith.constant dense<0.000000e+00> : vector<16x64xf32>
    %2 = tpu.matmul %0, %1, %cst {dimension_numbers = #tpu.dot_dimension_numbers<[1], [0], [0], [1], [0, 0, 1, 1], [], []>} : vector<16x32xf32>, vector<32x64xf32>, vector<16x64xf32> -> vector<16x64xf32>
    %c0_3 = arith.constant 0 : index
    %c0_4 = arith.constant 0 : index
    %3 = vector.load %arg3[%c0_3, %c0_4] : memref<1x64xf32, #tpu.memory_space<vmem>>, vector<1x64xf32>
    %4 = vector.broadcast %3 : vector<1x64xf32> to vector<16x64xf32>
    %5 = arith.addf %2, %4 : vector<16x64xf32>
    %cst_5 = arith.constant 0.000000e+00 : f32
    %6 = vector.broadcast %cst_5 : f32 to vector<16x64xf32>
    %7 = arith.maximumf %5, %6 : vector<16x64xf32>
    %c0_6 = arith.constant 0 : index
    %c0_7 = arith.constant 0 : index
    %8 = vector.load %arg4[%c0_6, %c0_7] : memref<64x32xf32, #tpu.memory_space<vmem>>, vector<64x32xf32>
    %cst_8 = arith.constant dense<0.000000e+00> : vector<16x32xf32>
    %9 = tpu.matmul %7, %8, %cst_8 {dimension_numbers = #tpu.dot_dimension_numbers<[1], [0], [0], [1], [0, 0, 1, 1], [], []>} : vector<16x64xf32>, vector<64x32xf32>, vector<16x32xf32> -> vector<16x32xf32>
    %c0_9 = arith.constant 0 : index
    %c0_10 = arith.constant 0 : index
    %10 = vector.load %arg5[%c0_9, %c0_10] : memref<1x32xf32, #tpu.memory_space<vmem>>, vector<1x32xf32>
    %11 = vector.broadcast %10 : vector<1x32xf32> to vector<16x32xf32>
    %12 = arith.addf %9, %11 : vector<16x32xf32>
    %13 = arith.addf %0, %12 : vector<16x32xf32>
    %cst_11 = arith.constant dense<0.000000e+00> : vector<16xf32>
    %14 = vector.multi_reduction <add>, %13, %cst_11 [1] : vector<16x32xf32> to vector<16xf32>
    %15 = vector.shape_cast %14 : vector<16xf32> to vector<16x1xf32>
    %cst_12 = arith.constant 3.200000e+01 : f32
    %16 = vector.broadcast %cst_12 : f32 to vector<16x1xf32>
    %17 = arith.divf %15, %16 : vector<16x1xf32>
    %18 = vector.broadcast %17 : vector<16x1xf32> to vector<16x32xf32>
    %19 = arith.subf %13, %18 : vector<16x32xf32>
    %20 = arith.mulf %19, %19 : vector<16x32xf32>
    %cst_13 = arith.constant dense<0.000000e+00> : vector<16xf32>
    %21 = vector.multi_reduction <add>, %20, %cst_13 [1] : vector<16x32xf32> to vector<16xf32>
    %22 = vector.shape_cast %21 : vector<16xf32> to vector<16x1xf32>
    %cst_14 = arith.constant 3.200000e+01 : f32
    %23 = vector.broadcast %cst_14 : f32 to vector<16x1xf32>
    %24 = arith.divf %22, %23 : vector<16x1xf32>
    %cst_15 = arith.constant 9.99999974E-6 : f32
    %25 = vector.broadcast %cst_15 : f32 to vector<16x1xf32>
    %26 = arith.addf %24, %25 : vector<16x1xf32>
    %27 = math.rsqrt %26 : vector<16x1xf32>
    %28 = vector.broadcast %27 : vector<16x1xf32> to vector<16x32xf32>
    %29 = arith.mulf %19, %28 : vector<16x32xf32>
    %c0_16 = arith.constant 0 : index
    %c0_17 = arith.constant 0 : index
    %30 = vector.load %arg6[%c0_16, %c0_17] : memref<1x32xf32, #tpu.memory_space<vmem>>, vector<1x32xf32>
    %31 = vector.broadcast %30 : vector<1x32xf32> to vector<16x32xf32>
    %32 = arith.mulf %29, %31 : vector<16x32xf32>
    %c0_18 = arith.constant 0 : index
    %c0_19 = arith.constant 0 : index
    %33 = vector.load %arg7[%c0_18, %c0_19] : memref<1x32xf32, #tpu.memory_space<vmem>>, vector<1x32xf32>
    %34 = vector.broadcast %33 : vector<1x32xf32> to vector<16x32xf32>
    %35 = arith.addf %32, %34 : vector<16x32xf32>
    %c0_20 = arith.constant 0 : index
    %c0_21 = arith.constant 0 : index
    %36 = vector.load %arg8[%c0_20, %c0_21] : memref<16x32xf32, #tpu.memory_space<vmem>>, vector<16x32xf32>
    tpu.vector_store %arg8[%c0_20, %c0_21], %35 {strides = array<i32>} : memref<16x32xf32, #tpu.memory_space<vmem>>, vector<16x32xf32>,
    return
  }
  func.func @transform_0(%arg0: i32) -> (i32, i32) {
    %c0_i32 = arith.constant 0 : i32
    %c0_i32_0 = arith.constant 0 : i32
    return %arg0, %c0_i32 : i32, i32
  }
  func.func @transform_1(%arg0: i32) -> (i32, i32) {
    %c0_i32 = arith.constant 0 : i32
    %c0_i32_0 = arith.constant 0 : i32
    %c0_i32_1 = arith.constant 0 : i32
    return %c0_i32, %c0_i32_0 : i32, i32
  }
  func.func @transform_2(%arg0: i32) -> (i32, i32) {
    %c0_i32 = arith.constant 0 : i32
    %c0_i32_0 = arith.constant 0 : i32
    %c0_i32_1 = arith.constant 0 : i32
    return %c0_i32, %c0_i32_0 : i32, i32
  }
  func.func @transform_3(%arg0: i32) -> (i32, i32) {
    %c0_i32 = arith.constant 0 : i32
    %c0_i32_0 = arith.constant 0 : i32
    %c0_i32_1 = arith.constant 0 : i32
    return %c0_i32, %c0_i32_0 : i32, i32
  }
  func.func @transform_4(%arg0: i32) -> (i32, i32) {
    %c0_i32 = arith.constant 0 : i32
    %c0_i32_0 = arith.constant 0 : i32
    %c0_i32_1 = arith.constant 0 : i32
    return %c0_i32, %c0_i32_0 : i32, i32
  }
  func.func @transform_5(%arg0: i32) -> (i32, i32) {
    %c0_i32 = arith.constant 0 : i32
    %c0_i32_0 = arith.constant 0 : i32
    %c0_i32_1 = arith.constant 0 : i32
    return %c0_i32, %c0_i32_0 : i32, i32
  }
  func.func @transform_6(%arg0: i32) -> (i32, i32) {
    %c0_i32 = arith.constant 0 : i32
    %c0_i32_0 = arith.constant 0 : i32
    %c0_i32_1 = arith.constant 0 : i32
    return %c0_i32, %c0_i32_0 : i32, i32
  }
  func.func @transform_7(%arg0: i32) -> (i32, i32) {
    %c0_i32 = arith.constant 0 : i32
    %c0_i32_0 = arith.constant 0 : i32
    return %arg0, %c0_i32 : i32, i32
  }
}

module attributes {stable_mosaic.version = 11 : i64} {
  func.func @_attn_block_kernel(%arg0: i32, %arg1: memref<1x8x32xf32, #tpu.memory_space<vmem>>, %arg2: memref<32x96xf32, #tpu.memory_space<vmem>>, %arg3: memref<1x96xf32, #tpu.memory_space<vmem>>, %arg4: memref<32x32xf32, #tpu.memory_space<vmem>>, %arg5: memref<1x32xf32, #tpu.memory_space<vmem>>, %arg6: memref<8x8xf32, #tpu.memory_space<vmem>>, %arg7: memref<1x32xf32, #tpu.memory_space<vmem>>, %arg8: memref<1x32xf32, #tpu.memory_space<vmem>>, %arg9: memref<1x8x32xf32, #tpu.memory_space<vmem>>) attributes {dimension_semantics = [#tpu.dimension_semantics<parallel>], iteration_bounds = array<i64: 2>, scalar_prefetch = 0 : i64, scratch_operands = 0 : i64, tpu.core_type = #tpu.core_type<tc>, window_params = [{transform_indices = @transform_0, window_bounds = array<i64: 1, 8, 32>}, {pipeline_mode = #tpu.pipeline_mode<synchronous>, transform_indices = @transform_1, window_bounds = array<i64: 32, 96>}, {pipeline_mode = #tpu.pipeline_mode<synchronous>, transform_indices = @transform_2, window_bounds = array<i64: 1, 96>}, {pipeline_mode = #tpu.pipeline_mode<synchronous>, transform_indices = @transform_3, window_bounds = array<i64: 32, 32>}, {pipeline_mode = #tpu.pipeline_mode<synchronous>, transform_indices = @transform_4, window_bounds = array<i64: 1, 32>}, {pipeline_mode = #tpu.pipeline_mode<synchronous>, transform_indices = @transform_5, window_bounds = array<i64: 8, 8>}, {pipeline_mode = #tpu.pipeline_mode<synchronous>, transform_indices = @transform_6, window_bounds = array<i64: 1, 32>}, {pipeline_mode = #tpu.pipeline_mode<synchronous>, transform_indices = @transform_7, window_bounds = array<i64: 1, 32>}, {transform_indices = @transform_8, window_bounds = array<i64: 1, 8, 32>}]} {
    %c0 = arith.constant 0 : index
    %c0_0 = arith.constant 0 : index
    %c0_1 = arith.constant 0 : index
    %0 = vector.load %arg1[%c0, %c0_0, %c0_1] : memref<1x8x32xf32, #tpu.memory_space<vmem>>, vector<1x8x32xf32>
    %1 = vector.shape_cast %0 : vector<1x8x32xf32> to vector<8x32xf32>
    %c0_2 = arith.constant 0 : index
    %c0_3 = arith.constant 0 : index
    %2 = vector.load %arg2[%c0_2, %c0_3] : memref<32x96xf32, #tpu.memory_space<vmem>>, vector<32x96xf32>
    %cst = arith.constant dense<0.000000e+00> : vector<8x96xf32>
    %3 = tpu.matmul %1, %2, %cst {dimension_numbers = #tpu.dot_dimension_numbers<[1], [0], [0], [1], [0, 0, 1, 1], [], []>} : vector<8x32xf32>, vector<32x96xf32>, vector<8x96xf32> -> vector<8x96xf32>
    %c0_4 = arith.constant 0 : index
    %c0_5 = arith.constant 0 : index
    %4 = vector.load %arg3[%c0_4, %c0_5] : memref<1x96xf32, #tpu.memory_space<vmem>>, vector<1x96xf32>
    %5 = vector.broadcast %4 : vector<1x96xf32> to vector<8x96xf32>
    %6 = arith.addf %3, %5 : vector<8x96xf32>
    %c0_6 = arith.constant 0 : index
    %c0_7 = arith.constant 0 : index
    %7 = vector.load %arg6[%c0_6, %c0_7] : memref<8x8xf32, #tpu.memory_space<vmem>>, vector<8x8xf32>
    %8 = vector.extract_strided_slice %6 {offsets = [0, 0], sizes = [8, 16], strides = [1, 1]} : vector<8x96xf32> to vector<8x16xf32>
    %9 = vector.extract_strided_slice %6 {offsets = [0, 32], sizes = [8, 16], strides = [1, 1]} : vector<8x96xf32> to vector<8x16xf32>
    %10 = vector.extract_strided_slice %6 {offsets = [0, 64], sizes = [8, 16], strides = [1, 1]} : vector<8x96xf32> to vector<8x16xf32>
    %cst_8 = arith.constant dense<0.000000e+00> : vector<8x8xf32>
    %11 = tpu.matmul %8, %9, %cst_8 {dimension_numbers = #tpu.dot_dimension_numbers<[1], [1], [0], [0], [0, 0, 1, 0], [], []>} : vector<8x16xf32>, vector<8x16xf32>, vector<8x8xf32> -> vector<8x8xf32>
    %cst_9 = arith.constant 2.500000e-01 : f32
    %12 = vector.broadcast %cst_9 : f32 to vector<8x8xf32>
    %13 = arith.mulf %11, %12 : vector<8x8xf32>
    %14 = arith.addf %13, %7 : vector<8x8xf32>
    %cst_10 = arith.constant dense<0xFF800000> : vector<8xf32>
    %15 = vector.multi_reduction <maximumf>, %14, %cst_10 [1] : vector<8x8xf32> to vector<8xf32>
    %16 = vector.shape_cast %15 : vector<8xf32> to vector<8x1xf32>
    %17 = vector.broadcast %16 : vector<8x1xf32> to vector<8x8xf32>
    %18 = arith.subf %14, %17 : vector<8x8xf32>
    %19 = math.exp %18 : vector<8x8xf32>
    %cst_11 = arith.constant dense<0.000000e+00> : vector<8xf32>
    %20 = vector.multi_reduction <add>, %19, %cst_11 [1] : vector<8x8xf32> to vector<8xf32>
    %21 = vector.shape_cast %20 : vector<8xf32> to vector<8x1xf32>
    %22 = tpu.reciprocal %21 {approx = true} : vector<8x1xf32> -> vector<8x1xf32>
    %23 = vector.broadcast %22 : vector<8x1xf32> to vector<8x8xf32>
    %24 = arith.mulf %19, %23 : vector<8x8xf32>
    %cst_12 = arith.constant dense<0.000000e+00> : vector<8x16xf32>
    %25 = tpu.matmul %24, %10, %cst_12 {dimension_numbers = #tpu.dot_dimension_numbers<[1], [0], [0], [1], [0, 0, 1, 1], [], []>} : vector<8x8xf32>, vector<8x16xf32>, vector<8x16xf32> -> vector<8x16xf32>
    %c0_13 = arith.constant 0 : index
    %c0_14 = arith.constant 0 : index
    %26 = vector.load %arg4[%c0_13, %c0_14] : memref<32x32xf32, #tpu.memory_space<vmem>>, vector<16x32xf32>
    %cst_15 = arith.constant dense<0.000000e+00> : vector<8x32xf32>
    %27 = tpu.matmul %25, %26, %cst_15 {dimension_numbers = #tpu.dot_dimension_numbers<[1], [0], [0], [1], [0, 0, 1, 1], [], []>} : vector<8x16xf32>, vector<16x32xf32>, vector<8x32xf32> -> vector<8x32xf32>
    %28 = vector.extract_strided_slice %6 {offsets = [0, 16], sizes = [8, 16], strides = [1, 1]} : vector<8x96xf32> to vector<8x16xf32>
    %29 = vector.extract_strided_slice %6 {offsets = [0, 48], sizes = [8, 16], strides = [1, 1]} : vector<8x96xf32> to vector<8x16xf32>
    %30 = vector.extract_strided_slice %6 {offsets = [0, 80], sizes = [8, 16], strides = [1, 1]} : vector<8x96xf32> to vector<8x16xf32>
    %cst_16 = arith.constant dense<0.000000e+00> : vector<8x8xf32>
    %31 = tpu.matmul %28, %29, %cst_16 {dimension_numbers = #tpu.dot_dimension_numbers<[1], [1], [0], [0], [0, 0, 1, 0], [], []>} : vector<8x16xf32>, vector<8x16xf32>, vector<8x8xf32> -> vector<8x8xf32>
    %cst_17 = arith.constant 2.500000e-01 : f32
    %32 = vector.broadcast %cst_17 : f32 to vector<8x8xf32>
    %33 = arith.mulf %31, %32 : vector<8x8xf32>
    %34 = arith.addf %33, %7 : vector<8x8xf32>
    %cst_18 = arith.constant dense<0xFF800000> : vector<8xf32>
    %35 = vector.multi_reduction <maximumf>, %34, %cst_18 [1] : vector<8x8xf32> to vector<8xf32>
    %36 = vector.shape_cast %35 : vector<8xf32> to vector<8x1xf32>
    %37 = vector.broadcast %36 : vector<8x1xf32> to vector<8x8xf32>
    %38 = arith.subf %34, %37 : vector<8x8xf32>
    %39 = math.exp %38 : vector<8x8xf32>
    %cst_19 = arith.constant dense<0.000000e+00> : vector<8xf32>
    %40 = vector.multi_reduction <add>, %39, %cst_19 [1] : vector<8x8xf32> to vector<8xf32>
    %41 = vector.shape_cast %40 : vector<8xf32> to vector<8x1xf32>
    %42 = tpu.reciprocal %41 {approx = true} : vector<8x1xf32> -> vector<8x1xf32>
    %43 = vector.broadcast %42 : vector<8x1xf32> to vector<8x8xf32>
    %44 = arith.mulf %39, %43 : vector<8x8xf32>
    %cst_20 = arith.constant dense<0.000000e+00> : vector<8x16xf32>
    %45 = tpu.matmul %44, %30, %cst_20 {dimension_numbers = #tpu.dot_dimension_numbers<[1], [0], [0], [1], [0, 0, 1, 1], [], []>} : vector<8x8xf32>, vector<8x16xf32>, vector<8x16xf32> -> vector<8x16xf32>
    %c16 = arith.constant 16 : index
    %c0_21 = arith.constant 0 : index
    %46 = vector.load %arg4[%c16, %c0_21] : memref<32x32xf32, #tpu.memory_space<vmem>>, vector<16x32xf32>
    %cst_22 = arith.constant dense<0.000000e+00> : vector<8x32xf32>
    %47 = tpu.matmul %45, %46, %cst_22 {dimension_numbers = #tpu.dot_dimension_numbers<[1], [0], [0], [1], [0, 0, 1, 1], [], []>} : vector<8x16xf32>, vector<16x32xf32>, vector<8x32xf32> -> vector<8x32xf32>
    %48 = arith.addf %27, %47 : vector<8x32xf32>
    %c0_23 = arith.constant 0 : index
    %c0_24 = arith.constant 0 : index
    %49 = vector.load %arg5[%c0_23, %c0_24] : memref<1x32xf32, #tpu.memory_space<vmem>>, vector<1x32xf32>
    %50 = vector.broadcast %49 : vector<1x32xf32> to vector<8x32xf32>
    %51 = arith.addf %48, %50 : vector<8x32xf32>
    %52 = arith.addf %1, %51 : vector<8x32xf32>
    %cst_25 = arith.constant dense<0.000000e+00> : vector<8xf32>
    %53 = vector.multi_reduction <add>, %52, %cst_25 [1] : vector<8x32xf32> to vector<8xf32>
    %54 = vector.shape_cast %53 : vector<8xf32> to vector<8x1xf32>
    %cst_26 = arith.constant 3.200000e+01 : f32
    %55 = vector.broadcast %cst_26 : f32 to vector<8x1xf32>
    %56 = arith.divf %54, %55 : vector<8x1xf32>
    %57 = vector.broadcast %56 : vector<8x1xf32> to vector<8x32xf32>
    %58 = arith.subf %52, %57 : vector<8x32xf32>
    %59 = arith.mulf %58, %58 : vector<8x32xf32>
    %cst_27 = arith.constant dense<0.000000e+00> : vector<8xf32>
    %60 = vector.multi_reduction <add>, %59, %cst_27 [1] : vector<8x32xf32> to vector<8xf32>
    %61 = vector.shape_cast %60 : vector<8xf32> to vector<8x1xf32>
    %cst_28 = arith.constant 3.200000e+01 : f32
    %62 = vector.broadcast %cst_28 : f32 to vector<8x1xf32>
    %63 = arith.divf %61, %62 : vector<8x1xf32>
    %cst_29 = arith.constant 9.99999974E-6 : f32
    %64 = vector.broadcast %cst_29 : f32 to vector<8x1xf32>
    %65 = arith.addf %63, %64 : vector<8x1xf32>
    %66 = math.rsqrt %65 : vector<8x1xf32>
    %67 = vector.broadcast %66 : vector<8x1xf32> to vector<8x32xf32>
    %68 = arith.mulf %58, %67 : vector<8x32xf32>
    %c0_30 = arith.constant 0 : index
    %c0_31 = arith.constant 0 : index
    %69 = vector.load %arg7[%c0_30, %c0_31] : memref<1x32xf32, #tpu.memory_space<vmem>>, vector<1x32xf32>
    %70 = vector.broadcast %69 : vector<1x32xf32> to vector<8x32xf32>
    %71 = arith.mulf %68, %70 : vector<8x32xf32>
    %c0_32 = arith.constant 0 : index
    %c0_33 = arith.constant 0 : index
    %72 = vector.load %arg8[%c0_32, %c0_33] : memref<1x32xf32, #tpu.memory_space<vmem>>, vector<1x32xf32>
    %73 = vector.broadcast %72 : vector<1x32xf32> to vector<8x32xf32>
    %74 = arith.addf %71, %73 : vector<8x32xf32>
    %c0_34 = arith.constant 0 : index
    %c0_35 = arith.constant 0 : index
    %c0_36 = arith.constant 0 : index
    %75 = vector.load %arg9[%c0_34, %c0_35, %c0_36] : memref<1x8x32xf32, #tpu.memory_space<vmem>>, vector<1x8x32xf32>
    %76 = vector.shape_cast %75 : vector<1x8x32xf32> to vector<8x32xf32>
    %77 = vector.shape_cast %74 : vector<8x32xf32> to vector<1x8x32xf32>
    tpu.vector_store %arg9[%c0_34, %c0_35, %c0_36], %77 {strides = array<i32>} : memref<1x8x32xf32, #tpu.memory_space<vmem>>, vector<1x8x32xf32>,
    return
  }
  func.func @transform_0(%arg0: i32) -> (i32, i32, i32) {
    %c0_i32 = arith.constant 0 : i32
    %c0_i32_0 = arith.constant 0 : i32
    %c0_i32_1 = arith.constant 0 : i32
    return %arg0, %c0_i32, %c0_i32_0 : i32, i32, i32
  }
  func.func @transform_1(%arg0: i32) -> (i32, i32) {
    %c0_i32 = arith.constant 0 : i32
    %c0_i32_0 = arith.constant 0 : i32
    %c0_i32_1 = arith.constant 0 : i32
    return %c0_i32, %c0_i32_0 : i32, i32
  }
  func.func @transform_2(%arg0: i32) -> (i32, i32) {
    %c0_i32 = arith.constant 0 : i32
    %c0_i32_0 = arith.constant 0 : i32
    %c0_i32_1 = arith.constant 0 : i32
    return %c0_i32, %c0_i32_0 : i32, i32
  }
  func.func @transform_3(%arg0: i32) -> (i32, i32) {
    %c0_i32 = arith.constant 0 : i32
    %c0_i32_0 = arith.constant 0 : i32
    %c0_i32_1 = arith.constant 0 : i32
    return %c0_i32, %c0_i32_0 : i32, i32
  }
  func.func @transform_4(%arg0: i32) -> (i32, i32) {
    %c0_i32 = arith.constant 0 : i32
    %c0_i32_0 = arith.constant 0 : i32
    %c0_i32_1 = arith.constant 0 : i32
    return %c0_i32, %c0_i32_0 : i32, i32
  }
  func.func @transform_5(%arg0: i32) -> (i32, i32) {
    %c0_i32 = arith.constant 0 : i32
    %c0_i32_0 = arith.constant 0 : i32
    %c0_i32_1 = arith.constant 0 : i32
    return %c0_i32, %c0_i32_0 : i32, i32
  }
  func.func @transform_6(%arg0: i32) -> (i32, i32) {
    %c0_i32 = arith.constant 0 : i32
    %c0_i32_0 = arith.constant 0 : i32
    %c0_i32_1 = arith.constant 0 : i32
    return %c0_i32, %c0_i32_0 : i32, i32
  }
  func.func @transform_7(%arg0: i32) -> (i32, i32) {
    %c0_i32 = arith.constant 0 : i32
    %c0_i32_0 = arith.constant 0 : i32
    %c0_i32_1 = arith.constant 0 : i32
    return %c0_i32, %c0_i32_0 : i32, i32
  }
  func.func @transform_8(%arg0: i32) -> (i32, i32, i32) {
    %c0_i32 = arith.constant 0 : i32
    %c0_i32_0 = arith.constant 0 : i32
    %c0_i32_1 = arith.constant 0 : i32
    return %arg0, %c0_i32, %c0_i32_0 : i32, i32, i32
  }
}

module attributes {stable_mosaic.version = 11 : i64} {
  func.func @_head_kernel(%arg0: i32, %arg1: memref<16x32xf32, #tpu.memory_space<vmem>>, %arg2: memref<32x32xf32, #tpu.memory_space<vmem>>, %arg3: memref<1x32xf32, #tpu.memory_space<vmem>>, %arg4: memref<32x4xf32, #tpu.memory_space<vmem>>, %arg5: memref<1x4xf32, #tpu.memory_space<vmem>>, %arg6: memref<16x4xf32, #tpu.memory_space<vmem>>) attributes {dimension_semantics = [#tpu.dimension_semantics<parallel>], iteration_bounds = array<i64: 1>, scalar_prefetch = 0 : i64, scratch_operands = 0 : i64, tpu.core_type = #tpu.core_type<tc>, window_params = [{transform_indices = @transform_0, window_bounds = array<i64: 16, 32>}, {pipeline_mode = #tpu.pipeline_mode<synchronous>, transform_indices = @transform_1, window_bounds = array<i64: 32, 32>}, {pipeline_mode = #tpu.pipeline_mode<synchronous>, transform_indices = @transform_2, window_bounds = array<i64: 1, 32>}, {pipeline_mode = #tpu.pipeline_mode<synchronous>, transform_indices = @transform_3, window_bounds = array<i64: 32, 4>}, {pipeline_mode = #tpu.pipeline_mode<synchronous>, transform_indices = @transform_4, window_bounds = array<i64: 1, 4>}, {transform_indices = @transform_5, window_bounds = array<i64: 16, 4>}]} {
    %c0 = arith.constant 0 : index
    %c0_0 = arith.constant 0 : index
    %0 = vector.load %arg1[%c0, %c0_0] : memref<16x32xf32, #tpu.memory_space<vmem>>, vector<16x32xf32>
    %c0_1 = arith.constant 0 : index
    %c0_2 = arith.constant 0 : index
    %1 = vector.load %arg2[%c0_1, %c0_2] : memref<32x32xf32, #tpu.memory_space<vmem>>, vector<32x32xf32>
    %cst = arith.constant dense<0.000000e+00> : vector<16x32xf32>
    %2 = tpu.matmul %0, %1, %cst {dimension_numbers = #tpu.dot_dimension_numbers<[1], [0], [0], [1], [0, 0, 1, 1], [], []>} : vector<16x32xf32>, vector<32x32xf32>, vector<16x32xf32> -> vector<16x32xf32>
    %c0_3 = arith.constant 0 : index
    %c0_4 = arith.constant 0 : index
    %3 = vector.load %arg3[%c0_3, %c0_4] : memref<1x32xf32, #tpu.memory_space<vmem>>, vector<1x32xf32>
    %4 = vector.broadcast %3 : vector<1x32xf32> to vector<16x32xf32>
    %5 = arith.addf %2, %4 : vector<16x32xf32>
    %cst_5 = arith.constant 0.000000e+00 : f32
    %6 = vector.broadcast %cst_5 : f32 to vector<16x32xf32>
    %7 = arith.maximumf %5, %6 : vector<16x32xf32>
    %c0_6 = arith.constant 0 : index
    %c0_7 = arith.constant 0 : index
    %8 = vector.load %arg4[%c0_6, %c0_7] : memref<32x4xf32, #tpu.memory_space<vmem>>, vector<32x4xf32>
    %cst_8 = arith.constant dense<0.000000e+00> : vector<16x4xf32>
    %9 = tpu.matmul %7, %8, %cst_8 {dimension_numbers = #tpu.dot_dimension_numbers<[1], [0], [0], [1], [0, 0, 1, 1], [], []>} : vector<16x32xf32>, vector<32x4xf32>, vector<16x4xf32> -> vector<16x4xf32>
    %c0_9 = arith.constant 0 : index
    %c0_10 = arith.constant 0 : index
    %10 = vector.load %arg5[%c0_9, %c0_10] : memref<1x4xf32, #tpu.memory_space<vmem>>, vector<1x4xf32>
    %11 = vector.broadcast %10 : vector<1x4xf32> to vector<16x4xf32>
    %12 = arith.addf %9, %11 : vector<16x4xf32>
    %c0_11 = arith.constant 0 : index
    %c0_12 = arith.constant 0 : index
    %13 = vector.load %arg6[%c0_11, %c0_12] : memref<16x4xf32, #tpu.memory_space<vmem>>, vector<16x4xf32>
    tpu.vector_store %arg6[%c0_11, %c0_12], %12 {strides = array<i32>} : memref<16x4xf32, #tpu.memory_space<vmem>>, vector<16x4xf32>,
    return
  }
  func.func @transform_0(%arg0: i32) -> (i32, i32) {
    %c0_i32 = arith.constant 0 : i32
    %c0_i32_0 = arith.constant 0 : i32
    return %arg0, %c0_i32 : i32, i32
  }
  func.func @transform_1(%arg0: i32) -> (i32, i32) {
    %c0_i32 = arith.constant 0 : i32
    %c0_i32_0 = arith.constant 0 : i32
    %c0_i32_1 = arith.constant 0 : i32
    return %c0_i32, %c0_i32_0 : i32, i32
  }
  func.func @transform_2(%arg0: i32) -> (i32, i32) {
    %c0_i32 = arith.constant 0 : i32
    %c0_i32_0 = arith.constant 0 : i32
    %c0_i32_1 = arith.constant 0 : i32
    return %c0_i32, %c0_i32_0 : i32, i32
  }
  func.func @transform_3(%arg0: i32) -> (i32, i32) {
    %c0_i32 = arith.constant 0 : i32
    %c0_i32_0 = arith.constant 0 : i32
    %c0_i32_1 = arith.constant 0 : i32
    return %c0_i32, %c0_i32_0 : i32, i32
  }
  func.func @transform_4(%arg0: i32) -> (i32, i32) {
    %c0_i32 = arith.constant 0 : i32
    %c0_i32_0 = arith.constant 0 : i32
    %c0_i32_1 = arith.constant 0 : i32
    return %c0_i32, %c0_i32_0 : i32, i32
  }
  func.func @transform_5(%arg0: i32) -> (i32, i32) {
    %c0_i32 = arith.constant 0 : i32
    %c0_i32_0 = arith.constant 0 : i32
    return %arg0, %c0_i32 : i32, i32
  }
}

</mosaic_0001>

<bundles_post_ra>
// kernel: transformer_forward.5
= control target key start
LH: loop header
LB: loop body
LE: loop exit
PB: predicated region body
PF: predicated region fallthrough
CT: control target
= control target key end

     0   :  { %s761_s30 = smov 0   ;;  %s847_s0 = inlined_call_operand.vmem [shape: f32[2,8,32], index: 0, kind: input, shape index: {}]   ;;  %s848_s1 = inlined_call_operand.vmem [shape: f32[8,32], index: 1, kind: input, shape index: {}]   ;;  %s849_s2 = inlined_call_operand.vmem [shape: f32[32,96], index: 2, kind: input, shape index: {}]   ;;  %s850_s3 = inlined_call_operand.vmem [shape: f32[1,96], index: 3, kind: input, shape index: {}]   ;;  %s851_s4 = inlined_call_operand.vmem [shape: f32[32,32], index: 4, kind: input, shape index: {}]   ;;  %s852_s5 = inlined_call_operand.vmem [shape: f32[1,32], index: 5, kind: input, shape index: {}]   ;;  %s853_s6 = inlined_call_operand.vmem [shape: f32[8,8], index: 6, kind: input, shape index: {}]   ;;  %s854_s7 = inlined_call_operand.vmem [shape: f32[1,32], index: 7, kind: input, shape index: {}]   ;;  %s855_s8 = inlined_call_operand.vmem [shape: f32[1,32], index: 8, kind: input, shape index: {}]   ;;  %s856_s9 = inlined_call_operand.vmem [shape: f32[2,8,32], index: 9, kind: output, shape index: {}]  }
   0x1 LB: > { %s649_s10 = sadd.s32 4294967295, %s703_s30   ;;  %p653_p0 = scmp.ge.s32.totalorder %s703_s30, 1  ;;  %s703_s30 = sphi %s761_s30, %s19_s30  }
   0x2   : > { %p286_p1 = scmp.lt.s32.totalorder %s703_s30, 3 }
   0x4   : > { %p287_p2 = pnand %p653_p0, %p286_p1 }
   0x5   : > { %p320_p3 = scmp.lt.s32.totalorder (!%p287_p2), %s649_s10, 1  ;;  %s705_s27 = smov (!%p287_p2), 112  }
   0x6   : > { %290 = sbr.rel (%p287_p2) target bundleno = 1196 (0x4ac), region = 56  ;;  %s706_s28 = smov (!%p287_p2), 96  }
   0x7   : > { %s707_s29 = smov (!%p287_p2), 80   ;;  %s708_s13 = smov (!%p287_p2), 64  }
   0x8   : > { %s709_s14 = smov (!%p287_p2), 48  }
   0xb   : > { %v335_v0 = vld [vmem:[%s849_s2 + $0x18] sm:$0xff]  ;;  %v334_v1 = vld [vmem:[%s849_s2 + $0x10] sm:$0xff]  ;;  %v333_v2 = vld [vmem:[%s849_s2 + $0x8] sm:$0xff]  ;;  %s858_s10 = smov (!%p320_p3, %s649_s10), 1  ;;  %vm340_vm0 = vcmask 261120   ;;  %vm368_vm1 = vcmask 130048  }
   0xc   : > { %356 = vmatpush.msra.mxu0 %v335_v0  ;;  %v332_v3 = vld [vmem:[%s849_s2] sm:$0xff]  ;;  %s654_s19 = sshll.u32 %s858_s10, 3  ;;  %vm395_vm2 = vcmask 64512   ;;  %v434_v33 = vld [vmem:[%s851_s4 + $0x8] sm:$0xff]  ;;  %v503_v43 = vld [vmem:[%s851_s4 + $0x18] sm:$0xff]  ;;  %v710_v54 = vmov 32.0  }
   0xd   : > { %s323_s22 = scalar_lea.vmem %s847_s0, %s654_s19  ;;  %v330_v5 = vld [vmem:[%s848_s1] sm:$0xff]  ;;  %v502_v44 = vld [vmem:[%s851_s4 + $0x10] sm:$0xff] }
   0xe   : > { %357 = vmatpush.msra.mxu0 %v334_v1  ;;  %v328_v4 = vld [vmem:[%s323_s22] sm:$0xff] }
   0xf   : > { %v329_v6 = vmul.f32 5.656854, %v328_v4  ;;  %v681_v8 = vld [vmem:[%s850_s3] ss:$0 sm:$0xff] }
  0x10   : > { %358 = vmatpush.msra.mxu0 %v333_v2  ;;  %v364_v15 = vld [vmem:[%s853_s6] sm:$0xff] }
  0x11   : > { %v792_v7 = vadd.f32 %v330_v5, %v329_v6  ;;  %v433_v42 = vld [vmem:[%s851_s4] sm:$0xff] }
  0x12   : > { %359 = vmatpush.msra.mxu0 %v332_v3  ;;  %v682_v47 = vld [vmem:[%s852_s5] ss:$0 sm:$0xff] }
  0x13   : > { %656 = vmatmul.msk.f32.vlgmr.msra.gmra.mxu0 %vm340_vm0, %v792_v7 }
  0x90   : > { %v361_v9 = vpop.f32.mrf.mxu0 }
  0x91   : > { %v362_v10 = vadd.f32 %v681_v8, %v361_v9 }
  0x93   : > { %435 = vrot.lane.b32.xlu1 %v362_v10, %s705_s27  ;;  %366 = vrot.lane.b32.xlu0 %v362_v10, %s706_s28 }
  0x9b   : > { %437 = vrot.lane.b32.xlu0 %v362_v10, %s707_s29 }
 0x105   : > { %v367_v11 = vpop.permute.xlu0 %366  ;;  %v436_v13 = vpop.permute.xlu1 %435 }
 0x106   : > { %657 = vmatpush.xpose.msk.msra.mxu1 %vm368_vm1, %v367_v11  ;;  %v683_v11 = vld [vmem:[%s854_s7] ss:$0 sm:$0xff] }
 0x109   : > { %658 = vmatmul.msk.f32.vlgmr.msra.gmra.mxu1 %vm368_vm1, %v362_v10 }
 0x10a   : > { %521 = vmatpush.msrb.mxu1 %v503_v43 }
 0x10c   : > { %522 = vmatpush.msrb.mxu1 %v502_v44 }
 0x10d   : > { %v438_v12 = vpop.permute.xlu0 %437 }
 0x10e   : > { %660 = vmatpush.xpose.msk.msra.mxu3 %vm368_vm1, %v438_v12 }
 0x111   : > { %661 = vmatmul.msk.f32.vlgmr.msra.gmra.mxu3 %vm368_vm1, %v436_v13  ;;  %v684_v13 = vld [vmem:[%s855_s8] ss:$0 sm:$0xff] }
 0x112   : > { %544 = vmatpush.msrb.mxu3 %v434_v33 }
 0x114   : > { %545 = vmatpush.msrb.mxu3 %v433_v42 }
 0x186   : > { %v390_v14 = vpop.f32.mrf.mxu1 }
 0x187   : > { %v393_v16 = vmul.f32 0.25, %v390_v14 }
 0x189   : > { %v394_v17 = vadd.f32 %v393_v16, %v364_v15 }
 0x18b   : > { %v396_v18 = vsel %vm395_vm2, %v394_v17, -inf }
 0x18c   : > { %397 = vmax.xlane.f32.xlu1 %v396_v18 }
 0x194   : > { %v460_v19 = vpop.f32.mrf.mxu3 }
 0x195   : > { %v463_v20 = vmul.f32 0.25, %v460_v19 }
 0x197   : > { %v464_v21 = vadd.f32 %v463_v20, %v364_v15 }
 0x199   : > { %v465_v22 = vsel %vm395_vm2, %v464_v21, -inf }
 0x19a   : > { %466 = vmax.xlane.f32.xlu2 %v465_v22 }
 0x1ff   : > { %v398_v23 = vpop.xlane.xlu1 %397 }
 0x200   : > { %v399_v24 = vsub.f32 %v394_v17, %v398_v23 }
 0x202   : > { %v400_v25 = vmul.f32 1.442695, %v399_v24 }
 0x204   : > { %685 = vpow2.f32 %v400_v25 }
 0x20a   : > { %v686_v26 = vpop.eup %685 }
 0x20b   : > { %v402_v27 = vsel %vm395_vm2, %v686_v26, 0.0 }
 0x20c   : > { %403 = vadd.xlane.f32.xlu2 %v402_v27 }
 0x20d   : > { %v467_v28 = vpop.xlane.xlu2 %466 }
 0x20e   : > { %v468_v29 = vsub.f32 %v464_v21, %v467_v28 }
 0x210   : > { %v469_v30 = vmul.f32 1.442695, %v468_v29 }
 0x212   : > { %687 = vpow2.f32 %v469_v30 }
 0x218   : > { %v688_v31 = vpop.eup %687 }
 0x219   : > { %v471_v32 = vsel %vm395_vm2, %v688_v31, 0.0 }
 0x21a   : > { %472 = vadd.xlane.f32.xlu0 %v471_v32 }
 0x224   : > { %407 = vrot.lane.b32.xlu2 %v362_v10, %s708_s13  ;;  %s327_s13 = scalar_lea.vmem %s856_s9, %s654_s19 }
 0x22c   : > { %476 = vrot.lane.b32.xlu2 %v362_v10, %s709_s14 }
 0x27f   : > { %v404_v34 = vpop.xlane.xlu2 %403 }
 0x280   : > { %689 = vrcp.f32 %v404_v34 }
 0x286   : > { %v690_v35 = vpop.eup %689 }
 0x287   : > { %v408_v36 = vpop.permute.xlu2 %407  ;;  %v406_v37 = vmul.f32 %v690_v35, %v686_v26 }
 0x288   : > { %428 = vmatpush.msra.mxu2 %v408_v36 }
 0x289   : > { %659 = vmatmul.msk.f32.vlgmr.msra.gmra.mxu2 %vm395_vm2, %v406_v37 }
 0x28d   : > { %v473_v38 = vpop.xlane.xlu0 %472 }
 0x28e   : > { %691 = vrcp.f32 %v473_v38 }
 0x28f   : > { %v477_v39 = vpop.permute.xlu2 %476  ;;  %693 = vrcp.f32 %v710_v54 }
 0x290   : > { %497 = vmatpush.msrb.mxu2 %v477_v39 }
 0x294   : > { %v692_v40 = vpop.eup %691 }
 0x295   : > { %v475_v41 = vmul.f32 %v692_v40, %v688_v31  ;;  %v694_v55 = vpop.eup %693 }
 0x296   : > { %v560_v56 = vmul.f32 32.0, %v694_v55  ;;  %vm564_vm3 = vweird.f32 %v694_v55 }
 0x297   : > { %662 = vmatmul.msk.f32.vlgmr.msrb.gmra.mxu2 %vm395_vm2, %v475_v41 }
 0x298   : > { %v561_v57 = vsub.f32 1.0, %v560_v56 }
 0x29a   : > { %v562_v58 = vmul.f32 %v694_v55, %v561_v57 }
 0x29c   : > { %v563_v59 = vadd.f32 %v694_v55, %v562_v58 }
 0x29e   : > { %v565_v60 = vsel %vm564_vm3, %v694_v55, %v563_v59 }
 0x30c   : > { %v430_v45 = vpop.f32.mrf.mxu2 }
 0x30d   : > { %664 = vmatmul.msk.f32.vlgmr.msrb.gmra.mxu3 %vm368_vm1, %v430_v45 }
 0x31a   : > { %v499_v46 = vpop.f32.mrf.mxu2 }
 0x31b   : > { %663 = vmatmul.msk.f32.vlgmr.msrb.gmra.mxu1 %vm368_vm1, %v499_v46 }
 0x390   : > { %v547_v48 = vpop.f32.mrf.mxu3 }
 0x398   : > { %v524_v49 = vpop.f32.mrf.mxu1 }
 0x399   : > { %v548_v50 = vadd.f32 %v547_v48, %v524_v49 }
 0x39b   : > { %v554_v51 = vadd.f32 %v682_v47, %v548_v50 }
 0x39d   : > { %v555_v52 = vadd.f32 %v554_v51, %v792_v7 }
 0x39f   : > { %v556_v53 = vsel %vm340_vm0, %v555_v52, 0.0 }
 0x3a0   : > { %557 = vadd.xlane.f32.xlu2 %v556_v53 }
 0x413   : > { %v558_v61 = vpop.xlane.xlu2 %557 }
 0x414   : > { %v566_v62 = vmul.f32 %v565_v60, %v558_v61 }
 0x416   : > { %v567_v63 = vsub.f32 %v555_v52, %v566_v62 }
 0x418   : > { %v568_v0 = vmul.f32 %v567_v63, %v567_v63 }
 0x41a   : > { %v569_v1 = vsel %vm340_vm0, %v568_v0, 0.0 }
 0x41b   : > { %570 = vadd.xlane.f32.xlu1 %v569_v1 }
 0x48e   : > { %v571_v2 = vpop.xlane.xlu1 %570 }
 0x48f   : > { %v572_v3 = vmul.f32 %v571_v2, %v565_v60 }
 0x491   : > { %v573_v4 = vadd.f32 1e-05, %v572_v3 }
 0x493   : > { %695 = vrsqrt.f32 %v573_v4  ;;  %vm580_vm5 = vweird.f32 %v573_v4 }
 0x499   : > { %v696_v5 = vpop.eup %695 }
 0x49a   : > { %v575_v6 = vmul.f32 %v696_v5, %v573_v4  ;;  %vm581_vm4 = vweird.f32 %v696_v5 }
 0x49b   : > { %vm582_vm6 = vmor %vm580_vm5, %vm581_vm4 }
 0x49c   : > { %v576_v7 = vmul.f32 %v696_v5, %v575_v6 }
 0x49e   : > { %v577_v8 = vmul.f32 0.5, %v576_v7 }
 0x4a0   : > { %v578_v9 = vsub.f32 1.5, %v577_v8 }
 0x4a2   : > { %v579_v10 = vmul.f32 %v696_v5, %v578_v9 }
 0x4a4   : > { %v583_v12 = vsel %vm582_vm6, %v696_v5, %v579_v10 }
 0x4a5   : > { %v584_v14 = vmul.f32 %v583_v12, %v567_v63 }
 0x4a7   : > { %v589_v15 = vmul.f32 %v683_v11, %v584_v14 }
 0x4a9   : > { %v594_v16 = vadd.f32 %v684_v13, %v589_v15 }
 0x4ab   : > { %595 = vst.msk [vmem:[%s327_s13] sm:$0xff] %vm340_vm0, %v594_v16 }
 0x4ac PF: > { %s19_s30 = sadd.s32 1, %s703_s30  }
 0x4ad   : > { %p16_p4 = scmp.ge.s32.totalorder %s19_s30, 4  }
 0x4af   :  { %18 = sbr.rel (!%p16_p4) target bundleno = 1 (0x1), region = 86 }

// kernel: transformer_forward.6
= control target key start
LH: loop header
LB: loop body
LE: loop exit
PB: predicated region body
PF: predicated region fallthrough
CT: control target
= control target key end

     0   :  { %vm36_vm0 = vcmask 261120   ;;  %vm80_vm1 = vcmask 523264   ;;  %v208_v30 = vmov 32.0   ;;  %s317_s1 = inlined_call_operand.vmem [shape: f32[32,64], index: 1, kind: input, shape index: {}]   ;;  %s318_s3 = inlined_call_operand.vmem [shape: f32[64,32], index: 3, kind: input, shape index: {}]   ;;  %s319_s0 = inlined_call_operand.vmem [shape: f32[16,32], index: 0, kind: input, shape index: {}]   ;;  %s320_s2 = inlined_call_operand.vmem [shape: f32[1,64], index: 2, kind: input, shape index: {}]   ;;  %s321_s4 = inlined_call_operand.vmem [shape: f32[1,32], index: 4, kind: input, shape index: {}]   ;;  %s322_s5 = inlined_call_operand.vmem [shape: f32[1,32], index: 5, kind: input, shape index: {}]   ;;  %s323_s6 = inlined_call_operand.vmem [shape: f32[1,32], index: 6, kind: input, shape index: {}]   ;;  %s324_s7 = inlined_call_operand.vmem [shape: f32[16,32], index: 7, kind: output, shape index: {}]  }
   0x1   :  { %v31_v0 = vld [vmem:[%s317_s1 + $0x18] sm:$0xff]  ;;  %v30_v1 = vld [vmem:[%s317_s1 + $0x10] sm:$0xff]  ;;  %v29_v2 = vld [vmem:[%s317_s1 + $0x8] sm:$0xff]  ;;  %202 = vrcp.f32 %v208_v30 }
   0x2   :  { %55 = vmatpush.msra.mxu0 %v31_v0  ;;  %185 = vmatpush.msra.mxu3 %v31_v0  ;;  %v75_v3 = vld [vmem:[%s318_s3 + $0x38] sm:$0xff]  ;;  %v74_v4 = vld [vmem:[%s318_s3 + $0x30] sm:$0xff]  ;;  %v28_v5 = vld [vmem:[%s317_s1] sm:$0xff] }
   0x3   :  { %95 = vmatpush.msra.mxu1 %v75_v3  ;;  %189 = vmatpush.msra.mxu2 %v75_v3  ;;  %v26_v6 = vld [vmem:[%s319_s0] sm:$0xff]  ;;  %v27_v7 = vld [vmem:[%s319_s0 + $0x8] sm:$0xff]  ;;  %v71_v10 = vld [vmem:[%s318_s3 + $0x18] sm:$0xff] }
   0x4   :  { %56 = vmatpush.msra.mxu0 %v30_v1  ;;  %186 = vmatpush.msra.mxu3 %v30_v1  ;;  %v73_v8 = vld [vmem:[%s318_s3 + $0x28] sm:$0xff]  ;;  %v72_v9 = vld [vmem:[%s318_s3 + $0x20] sm:$0xff]  ;;  %v70_v11 = vld [vmem:[%s318_s3 + $0x10] sm:$0xff] }
   0x5   :  { %96 = vmatpush.msra.mxu1 %v74_v4  ;;  %190 = vmatpush.msra.mxu2 %v74_v4  ;;  %v69_v12 = vld [vmem:[%s318_s3 + $0x8] sm:$0xff]  ;;  %v68_v13 = vld [vmem:[%s318_s3] sm:$0xff] }
   0x6   :  { %57 = vmatpush.msra.mxu0 %v29_v2  ;;  %187 = vmatpush.msra.mxu3 %v29_v2  ;;  %v198_v14 = vld [vmem:[%s320_s2] ss:$0 sm:$0xff] }
   0x7   :  { %97 = vmatpush.msra.mxu1 %v73_v8  ;;  %191 = vmatpush.msra.mxu2 %v73_v8  ;;  %v199_v21 = vld [vmem:[%s321_s4] ss:$0 sm:$0xff]  ;;  %v203_v31 = vpop.eup %202 }
   0x8   :  { %58 = vmatpush.msra.mxu0 %v28_v5  ;;  %188 = vmatpush.msra.mxu3 %v28_v5  ;;  %v119_v32 = vmul.f32 32.0, %v203_v31  ;;  %vm123_vm2 = vweird.f32 %v203_v31  ;;  %v200_v59 = vld [vmem:[%s322_s5] ss:$0 sm:$0xff] }
   0x9   :  { %181 = vmatmul.msk.f32.vlgmr.msra.gmra.mxu0 %vm36_vm0, %v26_v6  ;;  %182 = vmatmul.msk.f32.vlgmr.msra.gmra.mxu3 %vm36_vm0, %v27_v7  ;;  %v201_v62 = vld [vmem:[%s323_s6] ss:$0 sm:$0xff] }
   0xa   :  { %98 = vmatpush.msra.mxu1 %v72_v9  ;;  %192 = vmatpush.msra.mxu2 %v72_v9  ;;  %v120_v33 = vsub.f32 1.0, %v119_v32 }
   0xc   :  { %99 = vmatpush.msra.mxu1 %v71_v10  ;;  %193 = vmatpush.msra.mxu2 %v71_v10  ;;  %v121_v34 = vmul.f32 %v203_v31, %v120_v33 }
   0xe   :  { %100 = vmatpush.msra.mxu1 %v70_v11  ;;  %194 = vmatpush.msra.mxu2 %v70_v11  ;;  %v122_v35 = vadd.f32 %v203_v31, %v121_v34 }
  0x10   :  { %101 = vmatpush.msra.mxu1 %v69_v12  ;;  %195 = vmatpush.msra.mxu2 %v69_v12  ;;  %v124_v36 = vsel %vm123_vm2, %v203_v31, %v122_v35 }
  0x12   :  { %102 = vmatpush.msra.mxu1 %v68_v13  ;;  %196 = vmatpush.msra.mxu2 %v68_v13 }
  0x86   :  { %v60_v15 = vpop.f32.mrf.mxu0 }
  0x87   :  { %v61_v16 = vadd.f32 %v198_v14, %v60_v15 }
  0x89   :  { %v66_v17 = vmax.f32 %v61_v16, 0.0 }
  0x8b   :  { %183 = vmatmul.msk.f32.vlgmr.msra.gmra.mxu1 %vm80_vm1, %v66_v17 }
  0x8c   :  { %v63_v18 = vpop.f32.mrf.mxu3 }
  0x8d   :  { %v64_v19 = vadd.f32 %v198_v14, %v63_v18 }
  0x8f   :  { %v67_v20 = vmax.f32 %v64_v19, 0.0 }
  0x91   :  { %184 = vmatmul.msk.f32.vlgmr.msra.gmra.mxu2 %vm80_vm1, %v67_v20 }
 0x108   :  { %v104_v22 = vpop.f32.mrf.mxu1 }
 0x109   :  { %v105_v23 = vadd.f32 %v199_v21, %v104_v22 }
 0x10b   :  { %v110_v24 = vadd.f32 %v105_v23, %v26_v6 }
 0x10d   :  { %v112_v25 = vsel %vm36_vm0, %v110_v24, 0.0 }
 0x10e   :  { %113 = vadd.xlane.f32.xlu0 %v112_v25 }
 0x114   :  { %v107_v26 = vpop.f32.mrf.mxu2 }
 0x115   :  { %v108_v27 = vadd.f32 %v199_v21, %v107_v26 }
 0x117   :  { %v111_v28 = vadd.f32 %v108_v27, %v27_v7 }
 0x119   :  { %v115_v29 = vsel %vm36_vm0, %v111_v28, 0.0 }
 0x11a   :  { %116 = vadd.xlane.f32.xlu0 %v115_v29 }
 0x181   :  { %v114_v37 = vpop.xlane.xlu0 %113 }
 0x182   :  { %v125_v38 = vmul.f32 %v124_v36, %v114_v37 }
 0x184   :  { %v127_v39 = vsub.f32 %v110_v24, %v125_v38 }
 0x186   :  { %v129_v40 = vmul.f32 %v127_v39, %v127_v39 }
 0x188   :  { %v131_v41 = vsel %vm36_vm0, %v129_v40, 0.0 }
 0x189   :  { %132 = vadd.xlane.f32.xlu1 %v131_v41 }
 0x18d   :  { %v117_v42 = vpop.xlane.xlu0 %116 }
 0x18e   :  { %v126_v43 = vmul.f32 %v124_v36, %v117_v42 }
 0x190   :  { %v128_v44 = vsub.f32 %v111_v28, %v126_v43 }
 0x192   :  { %v130_v45 = vmul.f32 %v128_v44, %v128_v44 }
 0x194   :  { %v134_v46 = vsel %vm36_vm0, %v130_v45, 0.0 }
 0x195   :  { %135 = vadd.xlane.f32.xlu1 %v134_v46 }
 0x1fc   :  { %v133_v47 = vpop.xlane.xlu1 %132 }
 0x1fd   :  { %v137_v48 = vmul.f32 %v133_v47, %v124_v36 }
 0x1ff   :  { %v139_v49 = vadd.f32 1e-05, %v137_v48 }
 0x201   :  { %204 = vrsqrt.f32 %v139_v49  ;;  %vm147_vm4 = vweird.f32 %v139_v49 }
 0x207   :  { %v205_v50 = vpop.eup %204 }
 0x208   :  { %v142_v51 = vmul.f32 %v205_v50, %v139_v49  ;;  %v136_v52 = vpop.xlane.xlu1 %135  ;;  %vm148_vm3 = vweird.f32 %v205_v50 }
 0x209   :  { %v138_v53 = vmul.f32 %v136_v52, %v124_v36  ;;  %vm149_vm5 = vmor %vm147_vm4, %vm148_vm3 }
 0x20a   :  { %v143_v54 = vmul.f32 %v205_v50, %v142_v51 }
 0x20b   :  { %v140_v55 = vadd.f32 1e-05, %v138_v53 }
 0x20c   :  { %v144_v56 = vmul.f32 0.5, %v143_v54 }
 0x20d   :  { %206 = vrsqrt.f32 %v140_v55  ;;  %vm157_vm7 = vweird.f32 %v140_v55 }
 0x20e   :  { %v145_v57 = vsub.f32 1.5, %v144_v56 }
 0x210   :  { %v146_v58 = vmul.f32 %v205_v50, %v145_v57 }
 0x212   :  { %v150_v60 = vsel %vm149_vm5, %v205_v50, %v146_v58 }
 0x213   :  { %v207_v61 = vpop.eup %206  ;;  %v161_v63 = vmul.f32 %v150_v60, %v127_v39 }
 0x214   :  { %v152_v0 = vmul.f32 %v207_v61, %v140_v55  ;;  %vm158_vm6 = vweird.f32 %v207_v61 }
 0x215   :  { %v167_v1 = vmul.f32 %v200_v59, %v161_v63  ;;  %vm159_vm8 = vmor %vm157_vm7, %vm158_vm6 }
 0x216   :  { %v153_v2 = vmul.f32 %v207_v61, %v152_v0 }
 0x217   :  { %v173_v3 = vadd.f32 %v201_v62, %v167_v1 }
 0x218   :  { %v154_v4 = vmul.f32 0.5, %v153_v2 }
 0x219   :  { %175 = vst.msk [vmem:[%s324_s7] sm:$0xff] %vm36_vm0, %v173_v3 }
 0x21a   :  { %v155_v5 = vsub.f32 1.5, %v154_v4 }
 0x21c   :  { %v156_v6 = vmul.f32 %v207_v61, %v155_v5 }
 0x21e   :  { %v160_v7 = vsel %vm159_vm8, %v207_v61, %v156_v6 }
 0x21f   :  { %v162_v8 = vmul.f32 %v160_v7, %v128_v44 }
 0x221   :  { %v168_v9 = vmul.f32 %v200_v59, %v162_v8 }
 0x223   :  { %v174_v10 = vadd.f32 %v201_v62, %v168_v9 }
 0x225   :  { %176 = vst.msk [vmem:[%s324_s7 + $0x8] sm:$0xff] %vm36_vm0, %v174_v10 }

// kernel: transformer_forward.9
= control target key start
LH: loop header
LB: loop body
LE: loop exit
PB: predicated region body
PF: predicated region fallthrough
CT: control target
= control target key end

     0   :  { %vm30_vm0 = vcmask 261120   ;;  %vm99_vm1 = vcmask 31744   ;;  %s196_s1 = inlined_call_operand.vmem [shape: f32[32,32], index: 1, kind: input, shape index: {}]   ;;  %s197_s3 = inlined_call_operand.vmem [shape: f32[32,4], index: 3, kind: input, shape index: {}]   ;;  %s198_s2 = inlined_call_operand.vmem [shape: f32[1,32], index: 2, kind: input, shape index: {}]   ;;  %s199_s0 = inlined_call_operand.vmem [shape: f32[16,32], index: 0, kind: input, shape index: {}]   ;;  %s200_s4 = inlined_call_operand.vmem [shape: f32[1,4], index: 4, kind: input, shape index: {}]   ;;  %s201_s5 = inlined_call_operand.vmem [shape: f32[16,4], index: 5, kind: output, shape index: {}]  }
   0x1   :  { %v25_v0 = vld [vmem:[%s196_s1 + $0x18] sm:$0xff]  ;;  %v24_v1 = vld [vmem:[%s196_s1 + $0x10] sm:$0xff]  ;;  %v23_v2 = vld [vmem:[%s196_s1 + $0x8] sm:$0xff] }
   0x2   :  { %110 = vmatpush.msra.mxu2 %v25_v0  ;;  %49 = vmatpush.msra.mxu0 %v25_v0  ;;  %v65_v3 = vld [vmem:[%s197_s3 + $0x18] sm:$0xff]  ;;  %v22_v4 = vld [vmem:[%s196_s1] sm:$0xff]  ;;  %v21_v5 = vld [vmem:[%s199_s0 + $0x8] sm:$0xff] }
   0x3   :  { %114 = vmatpush.msra.mxu3 %v65_v3  ;;  %88 = vmatpush.msra.mxu1 %v65_v3  ;;  %v20_v6 = vld [vmem:[%s199_s0] sm:$0xff]  ;;  %v64_v7 = vld [vmem:[%s197_s3 + $0x10] sm:$0xff]  ;;  %v63_v8 = vld [vmem:[%s197_s3 + $0x8] sm:$0xff] }
   0x4   :  { %111 = vmatpush.msra.mxu2 %v24_v1  ;;  %50 = vmatpush.msra.mxu0 %v24_v1  ;;  %v62_v9 = vld [vmem:[%s197_s3] sm:$0xff] }
   0x5   :  { %115 = vmatpush.msra.mxu3 %v64_v7  ;;  %89 = vmatpush.msra.mxu1 %v64_v7  ;;  %v118_v10 = vld [vmem:[%s198_s2] ss:$0 sm:$0xff] }
   0x6   :  { %112 = vmatpush.msra.mxu2 %v23_v2  ;;  %51 = vmatpush.msra.mxu0 %v23_v2  ;;  %v119_v17 = vld [vmem:[%s200_s4] ss:$0 sm:$0xff] }
   0x7   :  { %116 = vmatpush.msra.mxu3 %v63_v8  ;;  %90 = vmatpush.msra.mxu1 %v63_v8 }
   0x8   :  { %113 = vmatpush.msra.mxu2 %v22_v4  ;;  %52 = vmatpush.msra.mxu0 %v22_v4 }
   0x9   :  { %107 = vmatmul.msk.f32.vlgmr.msra.gmra.mxu2 %vm30_vm0, %v21_v5  ;;  %106 = vmatmul.msk.f32.vlgmr.msra.gmra.mxu0 %vm30_vm0, %v20_v6 }
   0xa   :  { %117 = vmatpush.msra.mxu3 %v62_v9  ;;  %91 = vmatpush.msra.mxu1 %v62_v9 }
  0x86   :  { %v54_v11 = vpop.f32.mrf.mxu0 }
  0x87   :  { %v55_v12 = vadd.f32 %v118_v10, %v54_v11 }
  0x89   :  { %v60_v13 = vmax.f32 %v55_v12, 0.0 }
  0x8b   :  { %108 = vmatmul.msk.f32.vlgmr.msra.gmra.mxu1 %vm30_vm0, %v60_v13 }
  0x8c   :  { %v57_v14 = vpop.f32.mrf.mxu2 }
  0x8d   :  { %v58_v15 = vadd.f32 %v118_v10, %v57_v14 }
  0x8f   :  { %v61_v16 = vmax.f32 %v58_v15, 0.0 }
  0x91   :  { %109 = vmatmul.msk.f32.vlgmr.msra.gmra.mxu3 %vm30_vm0, %v61_v16 }
 0x108   :  { %v93_v18 = vpop.f32.mrf.mxu1 }
 0x109   :  { %v94_v19 = vadd.f32 %v119_v17, %v93_v18 }
 0x10b   :  { %100 = vst.msk [vmem:[%s201_s5] sm:$0xff] %vm99_vm1, %v94_v19 }
 0x114   :  { %v96_v20 = vpop.f32.mrf.mxu3 }
 0x115   :  { %v97_v21 = vadd.f32 %v119_v17, %v96_v20 }
 0x117   :  { %101 = vst.msk [vmem:[%s201_s5 + $0x8] sm:$0xff] %vm99_vm1, %v97_v21 }

// kernel: transformer_forward.7
= control target key start
LH: loop header
LB: loop body
LE: loop exit
PB: predicated region body
PF: predicated region fallthrough
CT: control target
= control target key end

     0   :  { %s726_s27 = smov 0   ;;  %s809_s0 = inlined_call_operand.vmem [shape: f32[2,8,32], index: 0, kind: input, shape index: {}]   ;;  %s810_s1 = inlined_call_operand.vmem [shape: f32[32,96], index: 1, kind: input, shape index: {}]   ;;  %s811_s2 = inlined_call_operand.vmem [shape: f32[1,96], index: 2, kind: input, shape index: {}]   ;;  %s812_s3 = inlined_call_operand.vmem [shape: f32[32,32], index: 3, kind: input, shape index: {}]   ;;  %s813_s4 = inlined_call_operand.vmem [shape: f32[1,32], index: 4, kind: input, shape index: {}]   ;;  %s814_s5 = inlined_call_operand.vmem [shape: f32[8,8], index: 5, kind: input, shape index: {}]   ;;  %s815_s6 = inlined_call_operand.vmem [shape: f32[1,32], index: 6, kind: input, shape index: {}]   ;;  %s816_s7 = inlined_call_operand.vmem [shape: f32[1,32], index: 7, kind: input, shape index: {}]   ;;  %s817_s8 = inlined_call_operand.vmem [shape: f32[2,8,32], index: 8, kind: output, shape index: {}]  }
   0x1 LB: > { %s619_s28 = sadd.s32 4294967295, %s673_s27   ;;  %p623_p0 = scmp.ge.s32.totalorder %s673_s27, 1  ;;  %s673_s27 = sphi %s726_s27, %s18_s27  }
   0x2   : > { %p261_p1 = scmp.lt.s32.totalorder %s673_s27, 3 }
   0x4   : > { %p262_p2 = pnand %p623_p0, %p261_p1 }
   0x5   : > { %p293_p3 = scmp.lt.s32.totalorder (!%p262_p2), %s619_s28, 1  ;;  %s675_s21 = smov (!%p262_p2), 112  }
   0x6   : > { %265 = sbr.rel (%p262_p2) target bundleno = 1196 (0x4ac), region = 52  ;;  %s676_s22 = smov (!%p262_p2), 96  }
   0x7   : > { %s677_s23 = smov (!%p262_p2), 80   ;;  %s678_s26 = smov (!%p262_p2), 64  }
   0x8   : > { %s679_s29 = smov (!%p262_p2), 48  }
   0xb   : > { %v305_v0 = vld [vmem:[%s810_s1 + $0x18] sm:$0xff]  ;;  %v304_v1 = vld [vmem:[%s810_s1 + $0x10] sm:$0xff]  ;;  %v303_v2 = vld [vmem:[%s810_s1 + $0x8] sm:$0xff]  ;;  %s819_s28 = smov (!%p293_p3, %s619_s28), 1  ;;  %vm310_vm0 = vcmask 261120   ;;  %vm338_vm1 = vcmask 130048  }
   0xc   : > { %326 = vmatpush.msra.mxu0 %v305_v0  ;;  %v302_v3 = vld [vmem:[%s810_s1] sm:$0xff]  ;;  %s624_s15 = sshll.u32 %s819_s28, 3  ;;  %vm365_vm2 = vcmask 64512   ;;  %v404_v30 = vld [vmem:[%s812_s3 + $0x8] sm:$0xff]  ;;  %v473_v40 = vld [vmem:[%s812_s3 + $0x18] sm:$0xff]  ;;  %v680_v51 = vmov 32.0  }
   0xd   : > { %s296_s18 = scalar_lea.vmem %s809_s0, %s624_s15  ;;  %v651_v5 = vld [vmem:[%s811_s2] ss:$0 sm:$0xff]  ;;  %v472_v41 = vld [vmem:[%s812_s3 + $0x10] sm:$0xff]  ;;  %s300_s25 = scalar_lea.vmem %s817_s8, %s624_s15 }
   0xe   : > { %327 = vmatpush.msra.mxu0 %v304_v1  ;;  %v754_v4 = vld [vmem:[%s296_s18] sm:$0xff] }
   0xf   : > { %v334_v12 = vld [vmem:[%s814_s5] sm:$0xff] }
  0x10   : > { %328 = vmatpush.msra.mxu0 %v303_v2  ;;  %v403_v39 = vld [vmem:[%s812_s3] sm:$0xff] }
  0x11   : > { %v652_v44 = vld [vmem:[%s813_s4] ss:$0 sm:$0xff] }
  0x12   : > { %329 = vmatpush.msra.mxu0 %v302_v3 }
  0x13   : > { %626 = vmatmul.msk.f32.vlgmr.msra.gmra.mxu0 %vm310_vm0, %v754_v4 }
  0x90   : > { %v331_v6 = vpop.f32.mrf.mxu0 }
  0x91   : > { %v332_v7 = vadd.f32 %v651_v5, %v331_v6 }
  0x93   : > { %405 = vrot.lane.b32.xlu1 %v332_v7, %s675_s21  ;;  %336 = vrot.lane.b32.xlu0 %v332_v7, %s676_s22 }
  0x9b   : > { %407 = vrot.lane.b32.xlu0 %v332_v7, %s677_s23 }
 0x105   : > { %v337_v8 = vpop.permute.xlu0 %336  ;;  %v406_v10 = vpop.permute.xlu1 %405 }
 0x106   : > { %627 = vmatpush.xpose.msk.msra.mxu1 %vm338_vm1, %v337_v8  ;;  %v653_v8 = vld [vmem:[%s815_s6] ss:$0 sm:$0xff] }
 0x109   : > { %628 = vmatmul.msk.f32.vlgmr.msra.gmra.mxu1 %vm338_vm1, %v332_v7 }
 0x10a   : > { %491 = vmatpush.msrb.mxu1 %v473_v40 }
 0x10c   : > { %492 = vmatpush.msrb.mxu1 %v472_v41 }
 0x10d   : > { %v408_v9 = vpop.permute.xlu0 %407 }
 0x10e   : > { %630 = vmatpush.xpose.msk.msra.mxu3 %vm338_vm1, %v408_v9 }
 0x111   : > { %631 = vmatmul.msk.f32.vlgmr.msra.gmra.mxu3 %vm338_vm1, %v406_v10  ;;  %v654_v10 = vld [vmem:[%s816_s7] ss:$0 sm:$0xff] }
 0x112   : > { %514 = vmatpush.msrb.mxu3 %v404_v30 }
 0x114   : > { %515 = vmatpush.msrb.mxu3 %v403_v39 }
 0x186   : > { %v360_v11 = vpop.f32.mrf.mxu1 }
 0x187   : > { %v363_v13 = vmul.f32 0.25, %v360_v11 }
 0x189   : > { %v364_v14 = vadd.f32 %v363_v13, %v334_v12 }
 0x18b   : > { %v366_v15 = vsel %vm365_vm2, %v364_v14, -inf }
 0x18c   : > { %367 = vmax.xlane.f32.xlu1 %v366_v15 }
 0x194   : > { %v430_v16 = vpop.f32.mrf.mxu3 }
 0x195   : > { %v433_v17 = vmul.f32 0.25, %v430_v16 }
 0x197   : > { %v434_v18 = vadd.f32 %v433_v17, %v334_v12 }
 0x199   : > { %v435_v19 = vsel %vm365_vm2, %v434_v18, -inf }
 0x19a   : > { %436 = vmax.xlane.f32.xlu2 %v435_v19 }
 0x1ff   : > { %v368_v20 = vpop.xlane.xlu1 %367 }
 0x200   : > { %v369_v21 = vsub.f32 %v364_v14, %v368_v20 }
 0x202   : > { %v370_v22 = vmul.f32 1.442695, %v369_v21 }
 0x204   : > { %655 = vpow2.f32 %v370_v22 }
 0x20a   : > { %v656_v23 = vpop.eup %655 }
 0x20b   : > { %v372_v24 = vsel %vm365_vm2, %v656_v23, 0.0 }
 0x20c   : > { %373 = vadd.xlane.f32.xlu2 %v372_v24 }
 0x20d   : > { %v437_v25 = vpop.xlane.xlu2 %436 }
 0x20e   : > { %v438_v26 = vsub.f32 %v434_v18, %v437_v25 }
 0x210   : > { %v439_v27 = vmul.f32 1.442695, %v438_v26 }
 0x212   : > { %657 = vpow2.f32 %v439_v27 }
 0x218   : > { %v658_v28 = vpop.eup %657 }
 0x219   : > { %v441_v29 = vsel %vm365_vm2, %v658_v28, 0.0 }
 0x21a   : > { %442 = vadd.xlane.f32.xlu0 %v441_v29 }
 0x224   : > { %377 = vrot.lane.b32.xlu2 %v332_v7, %s678_s26 }
 0x22c   : > { %446 = vrot.lane.b32.xlu2 %v332_v7, %s679_s29 }
 0x27f   : > { %v374_v31 = vpop.xlane.xlu2 %373 }
 0x280   : > { %659 = vrcp.f32 %v374_v31 }
 0x286   : > { %v660_v32 = vpop.eup %659 }
 0x287   : > { %v378_v33 = vpop.permute.xlu2 %377  ;;  %v376_v34 = vmul.f32 %v660_v32, %v656_v23 }
 0x288   : > { %398 = vmatpush.msra.mxu2 %v378_v33 }
 0x289   : > { %629 = vmatmul.msk.f32.vlgmr.msra.gmra.mxu2 %vm365_vm2, %v376_v34 }
 0x28d   : > { %v443_v35 = vpop.xlane.xlu0 %442 }
 0x28e   : > { %661 = vrcp.f32 %v443_v35 }
 0x28f   : > { %v447_v36 = vpop.permute.xlu2 %446  ;;  %663 = vrcp.f32 %v680_v51 }
 0x290   : > { %467 = vmatpush.msrb.mxu2 %v447_v36 }
 0x294   : > { %v662_v37 = vpop.eup %661 }
 0x295   : > { %v445_v38 = vmul.f32 %v662_v37, %v658_v28  ;;  %v664_v52 = vpop.eup %663 }
 0x296   : > { %v530_v53 = vmul.f32 32.0, %v664_v52  ;;  %vm534_vm3 = vweird.f32 %v664_v52 }
 0x297   : > { %632 = vmatmul.msk.f32.vlgmr.msrb.gmra.mxu2 %vm365_vm2, %v445_v38 }
 0x298   : > { %v531_v54 = vsub.f32 1.0, %v530_v53 }
 0x29a   : > { %v532_v55 = vmul.f32 %v664_v52, %v531_v54 }
 0x29c   : > { %v533_v56 = vadd.f32 %v664_v52, %v532_v55 }
 0x29e   : > { %v535_v57 = vsel %vm534_vm3, %v664_v52, %v533_v56 }
 0x30c   : > { %v400_v42 = vpop.f32.mrf.mxu2 }
 0x30d   : > { %634 = vmatmul.msk.f32.vlgmr.msrb.gmra.mxu3 %vm338_vm1, %v400_v42 }
 0x31a   : > { %v469_v43 = vpop.f32.mrf.mxu2 }
 0x31b   : > { %633 = vmatmul.msk.f32.vlgmr.msrb.gmra.mxu1 %vm338_vm1, %v469_v43 }
 0x390   : > { %v517_v45 = vpop.f32.mrf.mxu3 }
 0x398   : > { %v494_v46 = vpop.f32.mrf.mxu1 }
 0x399   : > { %v518_v47 = vadd.f32 %v517_v45, %v494_v46 }
 0x39b   : > { %v524_v48 = vadd.f32 %v652_v44, %v518_v47 }
 0x39d   : > { %v525_v49 = vadd.f32 %v524_v48, %v754_v4 }
 0x39f   : > { %v526_v50 = vsel %vm310_vm0, %v525_v49, 0.0 }
 0x3a0   : > { %527 = vadd.xlane.f32.xlu2 %v526_v50 }
 0x413   : > { %v528_v58 = vpop.xlane.xlu2 %527 }
 0x414   : > { %v536_v59 = vmul.f32 %v535_v57, %v528_v58 }
 0x416   : > { %v537_v60 = vsub.f32 %v525_v49, %v536_v59 }
 0x418   : > { %v538_v61 = vmul.f32 %v537_v60, %v537_v60 }
 0x41a   : > { %v539_v62 = vsel %vm310_vm0, %v538_v61, 0.0 }
 0x41b   : > { %540 = vadd.xlane.f32.xlu1 %v539_v62 }
 0x48e   : > { %v541_v63 = vpop.xlane.xlu1 %540 }
 0x48f   : > { %v542_v0 = vmul.f32 %v541_v63, %v535_v57 }
 0x491   : > { %v543_v1 = vadd.f32 1e-05, %v542_v0 }
 0x493   : > { %665 = vrsqrt.f32 %v543_v1  ;;  %vm550_vm5 = vweird.f32 %v543_v1 }
 0x499   : > { %v666_v2 = vpop.eup %665 }
 0x49a   : > { %v545_v3 = vmul.f32 %v666_v2, %v543_v1  ;;  %vm551_vm4 = vweird.f32 %v666_v2 }
 0x49b   : > { %vm552_vm6 = vmor %vm550_vm5, %vm551_vm4 }
 0x49c   : > { %v546_v4 = vmul.f32 %v666_v2, %v545_v3 }
 0x49e   : > { %v547_v5 = vmul.f32 0.5, %v546_v4 }
 0x4a0   : > { %v548_v6 = vsub.f32 1.5, %v547_v5 }
 0x4a2   : > { %v549_v7 = vmul.f32 %v666_v2, %v548_v6 }
 0x4a4   : > { %v553_v9 = vsel %vm552_vm6, %v666_v2, %v549_v7 }
 0x4a5   : > { %v554_v11 = vmul.f32 %v553_v9, %v537_v60 }
 0x4a7   : > { %v559_v12 = vmul.f32 %v653_v8, %v554_v11 }
 0x4a9   : > { %v564_v13 = vadd.f32 %v654_v10, %v559_v12 }
 0x4ab   : > { %565 = vst.msk [vmem:[%s300_s25] sm:$0xff] %vm310_vm0, %v564_v13 }
 0x4ac PF: > { %s18_s27 = sadd.s32 1, %s673_s27  }
 0x4ad   : > { %p15_p4 = scmp.ge.s32.totalorder %s18_s27, 4  }
 0x4af   :  { %17 = sbr.rel (!%p15_p4) target bundleno = 1 (0x1), region = 82 }

</bundles_post_ra>
